<compile_context>
chip_gen: v7x
topology: tpu7x:2x2x1
jax: 0.10.0
libtpu: 0.0.40
codegen_flags: <defaults>
</compile_context>

<pallas_src>
import functools

import jax
import jax.numpy as jnp
from jax import lax
from jax.experimental import pallas as pl
from jax.experimental.pallas import tpu as pltpu


def _round_up(x, m):
    return ((x + m - 1) // m) * m


def _pack_gate_lanes(w, H, Hp):
    """Pad each H-wide gate block of the trailing 4H axis to Hp lanes.

    w: (..., 4*H) -> (..., 4*Hp); gate order [i, f, g, o] preserved, padding = 0.
    """
    lead = w.shape[:-1]
    w4 = w.reshape(lead + (4, H))
    pad = [(0, 0)] * (len(lead) + 1) + [(0, Hp - H)]
    return jnp.pad(w4, pad).reshape(lead + (4 * Hp,))


def _vmem_limit_bytes(Tc, Bp, Hp):
    """Chunked working set (double-buffered inputs) + generous headroom."""
    G = 4 * Hp
    need = 0
    need += 2 * 2 * Tc * Bp * G * 2      # gx_f / gx_b chunks, double-buffered, bf16
    need += 2 * 2 * Hp * G * 2           # W_hh (both dirs), double-buffered, bf16
    need += 2 * 2 * 1 * G * 4            # bias, f32
    need += 2 * 2 * 2 * Bp * Hp * 4      # h/c resident output blocks, f32
    need = int(need * 2) + (8 << 20)     # 2x + 8 MiB headroom (compiler scratch)
    return max(16 << 20, min(need, 48 << 20))


def _bilstm_chunk_kernel(gxf_ref, gxb_ref, whh_ref, b_ref,
                         h_out_ref, c_out_ref, *, seq_len):
    """One time-chunk of the bidirectional LSTM recurrence (both directions).

    gxf_ref : (Tc, Bp, 4*Hp) bf16  forward-dir x-projection (emb@W_ih), lane-padded gates
    gxb_ref : (Tc, Bp, 4*Hp) bf16  backward-dir x-projection, time-REVERSED on the host
    whh_ref : (2, Hp, 4*Hp)  bf16  recurrent weights per direction (resident block)
    b_ref   : (2, 1, 4*Hp)   f32   b_ih + b_hh per direction (resident block)
    h_out_ref, c_out_ref : (2, Bp, Hp) f32  VMEM-resident accumulators = final state
    Gate order matches PyTorch: [i, f, g, o].
    """
    chunk = gxf_ref.shape[0]          # static Python int (block shape)
    Hp = whh_ref.shape[1]
    c_idx = pl.program_id(0)

    @pl.when(c_idx == 0)
    def _():
        h_out_ref[...] = jnp.zeros_like(h_out_ref)
        c_out_ref[...] = jnp.zeros_like(c_out_ref)

    whh_f = whh_ref[0]                # (Hp, 4Hp) bf16
    whh_b = whh_ref[1]
    bias_f = b_ref[0]                 # (1, 4Hp) f32
    bias_b = b_ref[1]

    def gate_update(gates, c):
        i_g = jax.nn.sigmoid(gates[:, 0 * Hp:1 * Hp])
        f_g = jax.nn.sigmoid(gates[:, 1 * Hp:2 * Hp])
        g_g = jnp.tanh(gates[:, 2 * Hp:3 * Hp])
        o_g = jax.nn.sigmoid(gates[:, 3 * Hp:4 * Hp])
        c_new = f_g * c + i_g * g_g
        h_new = o_g * jnp.tanh(c_new)
        return h_new, c_new

    t_base = c_idx * chunk

    def step(t, carry):
        h_f, c_f, h_b, c_b = carry
        # Padded (masked) time steps only exist when seq_len % chunk != 0; the
        # backward buffer is pre-reversed on the host, so padding sits at the
        # end of time for BOTH directions and one mask covers both.
        valid = (t_base + t) < seq_len
        # Two independent dependence chains (fwd / bwd) interleave to hide
        # MXU/EUP latency of the M=16 recurrent matmuls.
        gates_f = (gxf_ref[t].astype(jnp.float32) + bias_f
                   + jnp.dot(h_f.astype(jnp.bfloat16), whh_f,
                             preferred_element_type=jnp.float32))
        gates_b = (gxb_ref[t].astype(jnp.float32) + bias_b
                   + jnp.dot(h_b.astype(jnp.bfloat16), whh_b,
                             preferred_element_type=jnp.float32))
        h_f_n, c_f_n = gate_update(gates_f, c_f)
        h_b_n, c_b_n = gate_update(gates_b, c_b)
        h_f = jnp.where(valid, h_f_n, h_f)
        c_f = jnp.where(valid, c_f_n, c_f)
        h_b = jnp.where(valid, h_b_n, h_b)
        c_b = jnp.where(valid, c_b_n, c_b)
        return (h_f, c_f, h_b, c_b)

    carry0 = (h_out_ref[0], c_out_ref[0], h_out_ref[1], c_out_ref[1])
    h_f, c_f, h_b, c_b = lax.fori_loop(0, chunk, step, carry0,
                                       unroll=max(1, min(4, chunk)))

    h_out_ref[0] = h_f
    h_out_ref[1] = h_b
    c_out_ref[0] = c_f
    c_out_ref[1] = c_b


def encoder_forward(x, params, *, time_chunk=32):
    """x: (S, B) int32 token ids.  params: PyTorch-layout weights.  Returns (hidden, cell)."""
    emb_table = params["embedding"]          # (V, E) f32
    w_ih = params["w_ih"]                    # (2, 4H, E)
    w_hh = params["w_hh"]                    # (2, 4H, H)
    bias = params["b_ih"] + params["b_hh"]   # (2, 4H)

    S, B = x.shape
    H = w_hh.shape[2]
    Hp = _round_up(H, 128)                   # lane-aligned gate blocks
    Bp = _round_up(B, 16)                    # full bf16 (16,128) sublane tiles on the MXU LHS
    Tc = max(1, min(time_chunk, S))          # time-chunk length
    Sp = _round_up(S, Tc)
    n_chunks = Sp // Tc
    G = 4 * Hp

    # ---- Glue (plain JAX, eval-mode identity dropout):
    # Fold embedding + input projection into one gather table.
    wih_t = jnp.transpose(w_ih, (0, 2, 1))                      # (2, E, 4H)
    wih_p = _pack_gate_lanes(wih_t, H, Hp)                      # (2, E, 4Hp)
    gx_table = jnp.einsum("ve,deg->vdg", emb_table, wih_p)      # (V, 2, 4Hp) f32

    gx = jnp.take(gx_table, x.reshape(-1), axis=0)              # (S*B, 2, 4Hp)
    gx = gx.reshape(S, B, 2, G)
    gx = jnp.pad(gx, ((0, 0), (0, Bp - B), (0, 0), (0, 0)))     # (S, Bp, 2, 4Hp)
    tpad = ((0, Sp - S), (0, 0), (0, 0))
    gx_f = jnp.pad(gx[:, :, 0, :], tpad).astype(jnp.bfloat16)       # (Sp, Bp, 4Hp)
    gx_b = jnp.pad(gx[::-1, :, 1, :], tpad).astype(jnp.bfloat16)    # time-reversed bwd dir

    # W_hh: (2,4H,H) -> (2,H,4H) -> lane-pad gates -> pad K rows to Hp -> (2, Hp, 4Hp)
    whh_t = jnp.transpose(w_hh, (0, 2, 1))
    whh_p = _pack_gate_lanes(whh_t, H, Hp)
    whh_packed = jnp.pad(
        whh_p, ((0, 0), (0, Hp - H), (0, 0))).astype(jnp.bfloat16)

    bias_packed = _pack_gate_lanes(bias, H, Hp)[:, None, :]     # (2, 1, 4Hp) f32

    kernel = functools.partial(_bilstm_chunk_kernel, seq_len=S)

    h_pad, c_pad = pl.pallas_call(
        kernel,
        out_shape=(
            jax.ShapeDtypeStruct((2, Bp, Hp), jnp.float32),
            jax.ShapeDtypeStruct((2, Bp, Hp), jnp.float32),
        ),
        grid_spec=pltpu.PrefetchScalarGridSpec(
            num_scalar_prefetch=0,
            grid=(n_chunks,),
            in_specs=[
                pl.BlockSpec((Tc, Bp, G), lambda c: (c, 0, 0)),   # gx fwd, time-chunked
                pl.BlockSpec((Tc, Bp, G), lambda c: (c, 0, 0)),   # gx bwd (pre-reversed)
                pl.BlockSpec((2, Hp, G), lambda c: (0, 0, 0)),    # W_hh (resident)
                pl.BlockSpec((2, 1, G), lambda c: (0, 0, 0)),     # bias (resident)
            ],
            out_specs=[
                pl.BlockSpec((2, Bp, Hp), lambda c: (0, 0, 0)),   # hidden (resident carry)
                pl.BlockSpec((2, Bp, Hp), lambda c: (0, 0, 0)),   # cell   (resident carry)
            ],
        ),
        compiler_params=pltpu.CompilerParams(
            dimension_semantics=("arbitrary",),                   # sequential carry over time
            vmem_limit_bytes=_vmem_limit_bytes(Tc, Bp, Hp),
        ),
    )(gx_f, gx_b, whh_packed, bias_packed)

    # Strip batch / hidden padding.
    hidden = h_pad[:, :B, :H]
    cell = c_pad[:, :B, :H]
    return hidden, cell


def _reference_forward(x, params):
    """Pure-JAX f32 reference (same math, lax.scan) for a correctness check."""
    emb_table = params["embedding"]
    w_ih, w_hh = params["w_ih"], params["w_hh"]
    b = params["b_ih"] + params["b_hh"]
    S, B = x.shape
    H = w_hh.shape[2]
    embedded = jnp.take(emb_table, x, axis=0).astype(jnp.float32)

    def run_dir(d, seq):
        wih_t = w_ih[d].T        # (E, 4H)
        whh_t = w_hh[d].T        # (H, 4H)
        bias = b[d][None, :]

        def step(carry, x_t):
            h, c = carry
            gates = x_t @ wih_t + h @ whh_t + bias
            i_g = jax.nn.sigmoid(gates[:, 0 * H:1 * H])
            f_g = jax.nn.sigmoid(gates[:, 1 * H:2 * H])
            g_g = jnp.tanh(gates[:, 2 * H:3 * H])
            o_g = jax.nn.sigmoid(gates[:, 3 * H:4 * H])
            c_new = f_g * c + i_g * g_g
            h_new = o_g * jnp.tanh(c_new)
            return (h_new, c_new), None

        init = (jnp.zeros((B, H), jnp.float32), jnp.zeros((B, H), jnp.float32))
        (h_fin, c_fin), _ = lax.scan(step, init, seq)
        return h_fin, c_fin

    h_f, c_f = run_dir(0, embedded)
    h_b, c_b = run_dir(1, embedded[::-1])
    return jnp.stack([h_f, h_b]), jnp.stack([c_f, c_b])


def init_params(key, input_dim, emb_dim, hidden_dim):
    """Deterministic synthetic parameters (shapes match nn.Embedding + nn.LSTM)."""
    k = jax.random.split(key, 5)
    H = hidden_dim
    bound = 1.0 / jnp.sqrt(jnp.float32(H))
    embedding = jax.random.normal(k[0], (input_dim, emb_dim), jnp.float32)
    w_ih = jax.random.uniform(k[1], (2, 4 * H, emb_dim), jnp.float32, -bound, bound)
    w_hh = jax.random.uniform(k[2], (2, 4 * H, H), jnp.float32, -bound, bound)
    b_ih = jax.random.uniform(k[3], (2, 4 * H), jnp.float32, -bound, bound)
    b_hh = jax.random.uniform(k[4], (2, 4 * H), jnp.float32, -bound, bound)
    return {
        "embedding": embedding,
        "w_ih": w_ih,
        "w_hh": w_hh,
        "b_ih": b_ih,
        "b_hh": b_hh,
    }


if __name__ == "__main__":
    # Small shapes consistent with the module.
    INPUT_DIM = 50      # vocab size
    EMB_DIM = 16
    HIDDEN_DIM = 32
    SEQ_LEN = 8
    BATCH = 2

    key = jax.random.PRNGKey(0)
    k_param, k_x = jax.random.split(key)
    params = init_params(k_param, INPUT_DIM, EMB_DIM, HIDDEN_DIM)
    x = jax.random.randint(k_x, (SEQ_LEN, BATCH), 0, INPUT_DIM, dtype=jnp.int32)

    h_ref, c_ref = _reference_forward(x, params)

    # Case 1: chunk divides S exactly (2 grid steps, no time padding).
    fwd4 = jax.jit(functools.partial(encoder_forward, time_chunk=4))
    hidden, cell = fwd4(x, params)
    jax.block_until_ready((hidden, cell))
    assert hidden.shape == (2, BATCH, HIDDEN_DIM)
    assert cell.shape == (2, BATCH, HIDDEN_DIM)
    # bf16 MXU operands / bf16 gx storage (f32 accumulation) -> loosened tolerances.
    assert jnp.allclose(hidden, h_ref, rtol=5e-2, atol=5e-2)
    assert jnp.allclose(cell, c_ref, rtol=5e-2, atol=5e-2)

    # Case 2: chunk does NOT divide S (exercises the padded-time-step masking).
    fwd3 = jax.jit(functools.partial(encoder_forward, time_chunk=3))
    hidden3, cell3 = fwd3(x, params)
    jax.block_until_ready((hidden3, cell3))
    assert jnp.allclose(hidden3, h_ref, rtol=5e-2, atol=5e-2)
    assert jnp.allclose(cell3, c_ref, rtol=5e-2, atol=5e-2)

    print("KERNEL_OK")
</pallas_src>

<mosaic_0001>
module attributes {stable_mosaic.version = 11 : i64} {
  func.func @_bilstm_chunk_kernel(%arg0: i32, %arg1: memref<4x16x512xbf16, #tpu.memory_space<vmem>>, %arg2: memref<4x16x512xbf16, #tpu.memory_space<vmem>>, %arg3: memref<2x128x512xbf16, #tpu.memory_space<vmem>>, %arg4: memref<2x1x512xf32, #tpu.memory_space<vmem>>, %arg5: memref<2x16x128xf32, #tpu.memory_space<vmem>>, %arg6: memref<2x16x128xf32, #tpu.memory_space<vmem>>) attributes {dimension_semantics = [#tpu.dimension_semantics<arbitrary>], iteration_bounds = array<i64: 2>, scalar_prefetch = 0 : i64, scratch_operands = 0 : i64, tpu.core_type = #tpu.core_type<tc>, window_params = [{transform_indices = @transform_0, window_bounds = array<i64: 4, 16, 512>}, {transform_indices = @transform_1, window_bounds = array<i64: 4, 16, 512>}, {pipeline_mode = #tpu.pipeline_mode<synchronous>, transform_indices = @transform_2, window_bounds = array<i64: 2, 128, 512>}, {pipeline_mode = #tpu.pipeline_mode<synchronous>, transform_indices = @transform_3, window_bounds = array<i64: 2, 1, 512>}, {pipeline_mode = #tpu.pipeline_mode<synchronous>, transform_indices = @transform_4, window_bounds = array<i64: 2, 16, 128>}, {pipeline_mode = #tpu.pipeline_mode<synchronous>, transform_indices = @transform_5, window_bounds = array<i64: 2, 16, 128>}]} {
    %c0_i32 = arith.constant 0 : i32
    %0 = arith.cmpi eq, %arg0, %c0_i32 : i32
    %1 = arith.extui %0 : i1 to i32
    %c0_i32_0 = arith.constant 0 : i32
    %2 = arith.cmpi ne, %1, %c0_i32_0 : i32
    scf.if %2 {
      %cst_87 = arith.constant 0.000000e+00 : f32
      %328 = vector.broadcast %cst_87 : f32 to vector<2x16x128xf32>
      %c0_88 = arith.constant 0 : index
      %c0_89 = arith.constant 0 : index
      %c0_90 = arith.constant 0 : index
      %329 = vector.load %arg5[%c0_88, %c0_89, %c0_90] : memref<2x16x128xf32, #tpu.memory_space<vmem>>, vector<2x16x128xf32>
      tpu.vector_store %arg5[%c0_88, %c0_89, %c0_90], %328 {strides = array<i32>} : memref<2x16x128xf32, #tpu.memory_space<vmem>>, vector<2x16x128xf32>,
      %cst_91 = arith.constant 0.000000e+00 : f32
      %330 = vector.broadcast %cst_91 : f32 to vector<2x16x128xf32>
      %c0_92 = arith.constant 0 : index
      %c0_93 = arith.constant 0 : index
      %c0_94 = arith.constant 0 : index
      %331 = vector.load %arg6[%c0_92, %c0_93, %c0_94] : memref<2x16x128xf32, #tpu.memory_space<vmem>>, vector<2x16x128xf32>
      tpu.vector_store %arg6[%c0_92, %c0_93, %c0_94], %330 {strides = array<i32>} : memref<2x16x128xf32, #tpu.memory_space<vmem>>, vector<2x16x128xf32>,
    } else {
    }
    %c0 = arith.constant 0 : index
    %c0_1 = arith.constant 0 : index
    %c0_2 = arith.constant 0 : index
    %3 = vector.load %arg3[%c0, %c0_1, %c0_2] : memref<2x128x512xbf16, #tpu.memory_space<vmem>>, vector<1x128x512xbf16>
    %4 = vector.shape_cast %3 : vector<1x128x512xbf16> to vector<128x512xbf16>
    %c1 = arith.constant 1 : index
    %c0_3 = arith.constant 0 : index
    %c0_4 = arith.constant 0 : index
    %5 = vector.load %arg3[%c1, %c0_3, %c0_4] : memref<2x128x512xbf16, #tpu.memory_space<vmem>>, vector<1x128x512xbf16>
    %6 = vector.shape_cast %5 : vector<1x128x512xbf16> to vector<128x512xbf16>
    %c0_5 = arith.constant 0 : index
    %c0_6 = arith.constant 0 : index
    %c0_7 = arith.constant 0 : index
    %7 = vector.load %arg4[%c0_5, %c0_6, %c0_7] : memref<2x1x512xf32, #tpu.memory_space<vmem>>, vector<1x1x512xf32>
    %8 = vector.shape_cast %7 : vector<1x1x512xf32> to vector<1x512xf32>
    %c1_8 = arith.constant 1 : index
    %c0_9 = arith.constant 0 : index
    %c0_10 = arith.constant 0 : index
    %9 = vector.load %arg4[%c1_8, %c0_9, %c0_10] : memref<2x1x512xf32, #tpu.memory_space<vmem>>, vector<1x1x512xf32>
    %10 = vector.shape_cast %9 : vector<1x1x512xf32> to vector<1x512xf32>
    %c4_i32 = arith.constant 4 : i32
    %11 = arith.muli %arg0, %c4_i32 : i32
    %c0_11 = arith.constant 0 : index
    %c0_12 = arith.constant 0 : index
    %c0_13 = arith.constant 0 : index
    %12 = vector.load %arg5[%c0_11, %c0_12, %c0_13] : memref<2x16x128xf32, #tpu.memory_space<vmem>>, vector<1x16x128xf32>
    %13 = vector.shape_cast %12 : vector<1x16x128xf32> to vector<16x128xf32>
    %c0_14 = arith.constant 0 : index
    %c0_15 = arith.constant 0 : index
    %c0_16 = arith.constant 0 : index
    %14 = vector.load %arg6[%c0_14, %c0_15, %c0_16] : memref<2x16x128xf32, #tpu.memory_space<vmem>>, vector<1x16x128xf32>
    %15 = vector.shape_cast %14 : vector<1x16x128xf32> to vector<16x128xf32>
    %c1_17 = arith.constant 1 : index
    %c0_18 = arith.constant 0 : index
    %c0_19 = arith.constant 0 : index
    %16 = vector.load %arg5[%c1_17, %c0_18, %c0_19] : memref<2x16x128xf32, #tpu.memory_space<vmem>>, vector<1x16x128xf32>
    %17 = vector.shape_cast %16 : vector<1x16x128xf32> to vector<16x128xf32>
    %c1_20 = arith.constant 1 : index
    %c0_21 = arith.constant 0 : index
    %c0_22 = arith.constant 0 : index
    %18 = vector.load %arg6[%c1_20, %c0_21, %c0_22] : memref<2x16x128xf32, #tpu.memory_space<vmem>>, vector<1x16x128xf32>
    %19 = vector.shape_cast %18 : vector<1x16x128xf32> to vector<16x128xf32>
    %c0_i32_23 = arith.constant 0 : i32
    %20 = arith.addi %11, %c0_i32_23 : i32
    %c8_i32 = arith.constant 8 : i32
    %21 = arith.cmpi slt, %20, %c8_i32 : i32
    %22 = arith.index_cast %c0_i32_23 : i32 to index
    %c0_24 = arith.constant 0 : index
    %c0_25 = arith.constant 0 : index
    %23 = vector.load %arg1[%22, %c0_24, %c0_25] : memref<4x16x512xbf16, #tpu.memory_space<vmem>>, vector<1x16x512xbf16>
    %24 = vector.shape_cast %23 : vector<1x16x512xbf16> to vector<16x512xbf16>
    %25 = arith.extf %24 : vector<16x512xbf16> to vector<16x512xf32>
    %26 = vector.broadcast %8 : vector<1x512xf32> to vector<16x512xf32>
    %27 = arith.addf %25, %26 : vector<16x512xf32>
    %28 = arith.truncf %13 : vector<16x128xf32> to vector<16x128xbf16>
    %cst = arith.constant dense<0.000000e+00> : vector<16x512xf32>
    %29 = tpu.matmul %28, %4, %cst {dimension_numbers = #tpu.dot_dimension_numbers<[1], [0], [0], [1], [0, 0, 1, 1], [], []>} : vector<16x128xbf16>, vector<128x512xbf16>, vector<16x512xf32> -> vector<16x512xf32>
    %30 = arith.addf %27, %29 : vector<16x512xf32>
    %31 = arith.index_cast %c0_i32_23 : i32 to index
    %c0_26 = arith.constant 0 : index
    %c0_27 = arith.constant 0 : index
    %32 = vector.load %arg2[%31, %c0_26, %c0_27] : memref<4x16x512xbf16, #tpu.memory_space<vmem>>, vector<1x16x512xbf16>
    %33 = vector.shape_cast %32 : vector<1x16x512xbf16> to vector<16x512xbf16>
    %34 = arith.extf %33 : vector<16x512xbf16> to vector<16x512xf32>
    %35 = vector.broadcast %10 : vector<1x512xf32> to vector<16x512xf32>
    %36 = arith.addf %34, %35 : vector<16x512xf32>
    %37 = arith.truncf %17 : vector<16x128xf32> to vector<16x128xbf16>
    %cst_28 = arith.constant dense<0.000000e+00> : vector<16x512xf32>
    %38 = tpu.matmul %37, %6, %cst_28 {dimension_numbers = #tpu.dot_dimension_numbers<[1], [0], [0], [1], [0, 0, 1, 1], [], []>} : vector<16x128xbf16>, vector<128x512xbf16>, vector<16x512xf32> -> vector<16x512xf32>
    %39 = arith.addf %36, %38 : vector<16x512xf32>
    %40 = vector.extract_strided_slice %30 {offsets = [0, 0], sizes = [16, 128], strides = [1, 1]} : vector<16x512xf32> to vector<16x128xf32>
    %41 = arith.negf %40 : vector<16x128xf32>
    %42 = math.exp %41 : vector<16x128xf32>
    %cst_29 = arith.constant 1.000000e+00 : f32
    %43 = vector.broadcast %cst_29 : f32 to vector<16x128xf32>
    %44 = arith.addf %43, %42 : vector<16x128xf32>
    %45 = arith.divf %43, %44 : vector<16x128xf32>
    %46 = vector.extract_strided_slice %30 {offsets = [0, 128], sizes = [16, 128], strides = [1, 1]} : vector<16x512xf32> to vector<16x128xf32>
    %47 = arith.negf %46 : vector<16x128xf32>
    %48 = math.exp %47 : vector<16x128xf32>
    %cst_30 = arith.constant 1.000000e+00 : f32
    %49 = vector.broadcast %cst_30 : f32 to vector<16x128xf32>
    %50 = arith.addf %49, %48 : vector<16x128xf32>
    %51 = arith.divf %49, %50 : vector<16x128xf32>
    %52 = vector.extract_strided_slice %30 {offsets = [0, 256], sizes = [16, 128], strides = [1, 1]} : vector<16x512xf32> to vector<16x128xf32>
    %53 = math.tanh %52 : vector<16x128xf32>
    %54 = vector.extract_strided_slice %30 {offsets = [0, 384], sizes = [16, 128], strides = [1, 1]} : vector<16x512xf32> to vector<16x128xf32>
    %55 = arith.negf %54 : vector<16x128xf32>
    %56 = math.exp %55 : vector<16x128xf32>
    %cst_31 = arith.constant 1.000000e+00 : f32
    %57 = vector.broadcast %cst_31 : f32 to vector<16x128xf32>
    %58 = arith.addf %57, %56 : vector<16x128xf32>
    %59 = arith.divf %57, %58 : vector<16x128xf32>
    %60 = arith.mulf %51, %15 : vector<16x128xf32>
    %61 = arith.mulf %45, %53 : vector<16x128xf32>
    %62 = arith.addf %60, %61 : vector<16x128xf32>
    %63 = math.tanh %62 : vector<16x128xf32>
    %64 = arith.mulf %59, %63 : vector<16x128xf32>
    %65 = vector.extract_strided_slice %39 {offsets = [0, 0], sizes = [16, 128], strides = [1, 1]} : vector<16x512xf32> to vector<16x128xf32>
    %66 = arith.negf %65 : vector<16x128xf32>
    %67 = math.exp %66 : vector<16x128xf32>
    %cst_32 = arith.constant 1.000000e+00 : f32
    %68 = vector.broadcast %cst_32 : f32 to vector<16x128xf32>
    %69 = arith.addf %68, %67 : vector<16x128xf32>
    %70 = arith.divf %68, %69 : vector<16x128xf32>
    %71 = vector.extract_strided_slice %39 {offsets = [0, 128], sizes = [16, 128], strides = [1, 1]} : vector<16x512xf32> to vector<16x128xf32>
    %72 = arith.negf %71 : vector<16x128xf32>
    %73 = math.exp %72 : vector<16x128xf32>
    %cst_33 = arith.constant 1.000000e+00 : f32
    %74 = vector.broadcast %cst_33 : f32 to vector<16x128xf32>
    %75 = arith.addf %74, %73 : vector<16x128xf32>
    %76 = arith.divf %74, %75 : vector<16x128xf32>
    %77 = vector.extract_strided_slice %39 {offsets = [0, 256], sizes = [16, 128], strides = [1, 1]} : vector<16x512xf32> to vector<16x128xf32>
    %78 = math.tanh %77 : vector<16x128xf32>
    %79 = vector.extract_strided_slice %39 {offsets = [0, 384], sizes = [16, 128], strides = [1, 1]} : vector<16x512xf32> to vector<16x128xf32>
    %80 = arith.negf %79 : vector<16x128xf32>
    %81 = math.exp %80 : vector<16x128xf32>
    %cst_34 = arith.constant 1.000000e+00 : f32
    %82 = vector.broadcast %cst_34 : f32 to vector<16x128xf32>
    %83 = arith.addf %82, %81 : vector<16x128xf32>
    %84 = arith.divf %82, %83 : vector<16x128xf32>
    %85 = arith.mulf %76, %19 : vector<16x128xf32>
    %86 = arith.mulf %70, %78 : vector<16x128xf32>
    %87 = arith.addf %85, %86 : vector<16x128xf32>
    %88 = math.tanh %87 : vector<16x128xf32>
    %89 = arith.mulf %84, %88 : vector<16x128xf32>
    %90 = arith.select %21, %64, %13 : vector<16x128xf32>
    %91 = arith.select %21, %62, %15 : vector<16x128xf32>
    %92 = arith.select %21, %89, %17 : vector<16x128xf32>
    %93 = arith.select %21, %87, %19 : vector<16x128xf32>
    %c1_i32 = arith.constant 1 : i32
    %94 = arith.addi %11, %c1_i32 : i32
    %c8_i32_35 = arith.constant 8 : i32
    %95 = arith.cmpi slt, %94, %c8_i32_35 : i32
    %96 = arith.index_cast %c1_i32 : i32 to index
    %c0_36 = arith.constant 0 : index
    %c0_37 = arith.constant 0 : index
    %97 = vector.load %arg1[%96, %c0_36, %c0_37] : memref<4x16x512xbf16, #tpu.memory_space<vmem>>, vector<1x16x512xbf16>
    %98 = vector.shape_cast %97 : vector<1x16x512xbf16> to vector<16x512xbf16>
    %99 = arith.extf %98 : vector<16x512xbf16> to vector<16x512xf32>
    %100 = vector.broadcast %8 : vector<1x512xf32> to vector<16x512xf32>
    %101 = arith.addf %99, %100 : vector<16x512xf32>
    %102 = arith.truncf %90 : vector<16x128xf32> to vector<16x128xbf16>
    %cst_38 = arith.constant dense<0.000000e+00> : vector<16x512xf32>
    %103 = tpu.matmul %102, %4, %cst_38 {dimension_numbers = #tpu.dot_dimension_numbers<[1], [0], [0], [1], [0, 0, 1, 1], [], []>} : vector<16x128xbf16>, vector<128x512xbf16>, vector<16x512xf32> -> vector<16x512xf32>
    %104 = arith.addf %101, %103 : vector<16x512xf32>
    %105 = arith.index_cast %c1_i32 : i32 to index
    %c0_39 = arith.constant 0 : index
    %c0_40 = arith.constant 0 : index
    %106 = vector.load %arg2[%105, %c0_39, %c0_40] : memref<4x16x512xbf16, #tpu.memory_space<vmem>>, vector<1x16x512xbf16>
    %107 = vector.shape_cast %106 : vector<1x16x512xbf16> to vector<16x512xbf16>
    %108 = arith.extf %107 : vector<16x512xbf16> to vector<16x512xf32>
    %109 = vector.broadcast %10 : vector<1x512xf32> to vector<16x512xf32>
    %110 = arith.addf %108, %109 : vector<16x512xf32>
    %111 = arith.truncf %92 : vector<16x128xf32> to vector<16x128xbf16>
    %cst_41 = arith.constant dense<0.000000e+00> : vector<16x512xf32>
    %112 = tpu.matmul %111, %6, %cst_41 {dimension_numbers = #tpu.dot_dimension_numbers<[1], [0], [0], [1], [0, 0, 1, 1], [], []>} : vector<16x128xbf16>, vector<128x512xbf16>, vector<16x512xf32> -> vector<16x512xf32>
    %113 = arith.addf %110, %112 : vector<16x512xf32>
    %114 = vector.extract_strided_slice %104 {offsets = [0, 0], sizes = [16, 128], strides = [1, 1]} : vector<16x512xf32> to vector<16x128xf32>
    %115 = arith.negf %114 : vector<16x128xf32>
    %116 = math.exp %115 : vector<16x128xf32>
    %cst_42 = arith.constant 1.000000e+00 : f32
    %117 = vector.broadcast %cst_42 : f32 to vector<16x128xf32>
    %118 = arith.addf %117, %116 : vector<16x128xf32>
    %119 = arith.divf %117, %118 : vector<16x128xf32>
    %120 = vector.extract_strided_slice %104 {offsets = [0, 128], sizes = [16, 128], strides = [1, 1]} : vector<16x512xf32> to vector<16x128xf32>
    %121 = arith.negf %120 : vector<16x128xf32>
    %122 = math.exp %121 : vector<16x128xf32>
    %cst_43 = arith.constant 1.000000e+00 : f32
    %123 = vector.broadcast %cst_43 : f32 to vector<16x128xf32>
    %124 = arith.addf %123, %122 : vector<16x128xf32>
    %125 = arith.divf %123, %124 : vector<16x128xf32>
    %126 = vector.extract_strided_slice %104 {offsets = [0, 256], sizes = [16, 128], strides = [1, 1]} : vector<16x512xf32> to vector<16x128xf32>
    %127 = math.tanh %126 : vector<16x128xf32>
    %128 = vector.extract_strided_slice %104 {offsets = [0, 384], sizes = [16, 128], strides = [1, 1]} : vector<16x512xf32> to vector<16x128xf32>
    %129 = arith.negf %128 : vector<16x128xf32>
    %130 = math.exp %129 : vector<16x128xf32>
    %cst_44 = arith.constant 1.000000e+00 : f32
    %131 = vector.broadcast %cst_44 : f32 to vector<16x128xf32>
    %132 = arith.addf %131, %130 : vector<16x128xf32>
    %133 = arith.divf %131, %132 : vector<16x128xf32>
    %134 = arith.mulf %125, %91 : vector<16x128xf32>
    %135 = arith.mulf %119, %127 : vector<16x128xf32>
    %136 = arith.addf %134, %135 : vector<16x128xf32>
    %137 = math.tanh %136 : vector<16x128xf32>
    %138 = arith.mulf %133, %137 : vector<16x128xf32>
    %139 = vector.extract_strided_slice %113 {offsets = [0, 0], sizes = [16, 128], strides = [1, 1]} : vector<16x512xf32> to vector<16x128xf32>
    %140 = arith.negf %139 : vector<16x128xf32>
    %141 = math.exp %140 : vector<16x128xf32>
    %cst_45 = arith.constant 1.000000e+00 : f32
    %142 = vector.broadcast %cst_45 : f32 to vector<16x128xf32>
    %143 = arith.addf %142, %141 : vector<16x128xf32>
    %144 = arith.divf %142, %143 : vector<16x128xf32>
    %145 = vector.extract_strided_slice %113 {offsets = [0, 128], sizes = [16, 128], strides = [1, 1]} : vector<16x512xf32> to vector<16x128xf32>
    %146 = arith.negf %145 : vector<16x128xf32>
    %147 = math.exp %146 : vector<16x128xf32>
    %cst_46 = arith.constant 1.000000e+00 : f32
    %148 = vector.broadcast %cst_46 : f32 to vector<16x128xf32>
    %149 = arith.addf %148, %147 : vector<16x128xf32>
    %150 = arith.divf %148, %149 : vector<16x128xf32>
    %151 = vector.extract_strided_slice %113 {offsets = [0, 256], sizes = [16, 128], strides = [1, 1]} : vector<16x512xf32> to vector<16x128xf32>
    %152 = math.tanh %151 : vector<16x128xf32>
    %153 = vector.extract_strided_slice %113 {offsets = [0, 384], sizes = [16, 128], strides = [1, 1]} : vector<16x512xf32> to vector<16x128xf32>
    %154 = arith.negf %153 : vector<16x128xf32>
    %155 = math.exp %154 : vector<16x128xf32>
    %cst_47 = arith.constant 1.000000e+00 : f32
    %156 = vector.broadcast %cst_47 : f32 to vector<16x128xf32>
    %157 = arith.addf %156, %155 : vector<16x128xf32>
    %158 = arith.divf %156, %157 : vector<16x128xf32>
    %159 = arith.mulf %150, %93 : vector<16x128xf32>
    %160 = arith.mulf %144, %152 : vector<16x128xf32>
    %161 = arith.addf %159, %160 : vector<16x128xf32>
    %162 = math.tanh %161 : vector<16x128xf32>
    %163 = arith.mulf %158, %162 : vector<16x128xf32>
    %164 = arith.select %95, %138, %90 : vector<16x128xf32>
    %165 = arith.select %95, %136, %91 : vector<16x128xf32>
    %166 = arith.select %95, %163, %92 : vector<16x128xf32>
    %167 = arith.select %95, %161, %93 : vector<16x128xf32>
    %c2_i32 = arith.constant 2 : i32
    %168 = arith.addi %11, %c2_i32 : i32
    %c8_i32_48 = arith.constant 8 : i32
    %169 = arith.cmpi slt, %168, %c8_i32_48 : i32
    %170 = arith.index_cast %c2_i32 : i32 to index
    %c0_49 = arith.constant 0 : index
    %c0_50 = arith.constant 0 : index
    %171 = vector.load %arg1[%170, %c0_49, %c0_50] : memref<4x16x512xbf16, #tpu.memory_space<vmem>>, vector<1x16x512xbf16>
    %172 = vector.shape_cast %171 : vector<1x16x512xbf16> to vector<16x512xbf16>
    %173 = arith.extf %172 : vector<16x512xbf16> to vector<16x512xf32>
    %174 = vector.broadcast %8 : vector<1x512xf32> to vector<16x512xf32>
    %175 = arith.addf %173, %174 : vector<16x512xf32>
    %176 = arith.truncf %164 : vector<16x128xf32> to vector<16x128xbf16>
    %cst_51 = arith.constant dense<0.000000e+00> : vector<16x512xf32>
    %177 = tpu.matmul %176, %4, %cst_51 {dimension_numbers = #tpu.dot_dimension_numbers<[1], [0], [0], [1], [0, 0, 1, 1], [], []>} : vector<16x128xbf16>, vector<128x512xbf16>, vector<16x512xf32> -> vector<16x512xf32>
    %178 = arith.addf %175, %177 : vector<16x512xf32>
    %179 = arith.index_cast %c2_i32 : i32 to index
    %c0_52 = arith.constant 0 : index
    %c0_53 = arith.constant 0 : index
    %180 = vector.load %arg2[%179, %c0_52, %c0_53] : memref<4x16x512xbf16, #tpu.memory_space<vmem>>, vector<1x16x512xbf16>
    %181 = vector.shape_cast %180 : vector<1x16x512xbf16> to vector<16x512xbf16>
    %182 = arith.extf %181 : vector<16x512xbf16> to vector<16x512xf32>
    %183 = vector.broadcast %10 : vector<1x512xf32> to vector<16x512xf32>
    %184 = arith.addf %182, %183 : vector<16x512xf32>
    %185 = arith.truncf %166 : vector<16x128xf32> to vector<16x128xbf16>
    %cst_54 = arith.constant dense<0.000000e+00> : vector<16x512xf32>
    %186 = tpu.matmul %185, %6, %cst_54 {dimension_numbers = #tpu.dot_dimension_numbers<[1], [0], [0], [1], [0, 0, 1, 1], [], []>} : vector<16x128xbf16>, vector<128x512xbf16>, vector<16x512xf32> -> vector<16x512xf32>
    %187 = arith.addf %184, %186 : vector<16x512xf32>
    %188 = vector.extract_strided_slice %178 {offsets = [0, 0], sizes = [16, 128], strides = [1, 1]} : vector<16x512xf32> to vector<16x128xf32>
    %189 = arith.negf %188 : vector<16x128xf32>
    %190 = math.exp %189 : vector<16x128xf32>
    %cst_55 = arith.constant 1.000000e+00 : f32
    %191 = vector.broadcast %cst_55 : f32 to vector<16x128xf32>
    %192 = arith.addf %191, %190 : vector<16x128xf32>
    %193 = arith.divf %191, %192 : vector<16x128xf32>
    %194 = vector.extract_strided_slice %178 {offsets = [0, 128], sizes = [16, 128], strides = [1, 1]} : vector<16x512xf32> to vector<16x128xf32>
    %195 = arith.negf %194 : vector<16x128xf32>
    %196 = math.exp %195 : vector<16x128xf32>
    %cst_56 = arith.constant 1.000000e+00 : f32
    %197 = vector.broadcast %cst_56 : f32 to vector<16x128xf32>
    %198 = arith.addf %197, %196 : vector<16x128xf32>
    %199 = arith.divf %197, %198 : vector<16x128xf32>
    %200 = vector.extract_strided_slice %178 {offsets = [0, 256], sizes = [16, 128], strides = [1, 1]} : vector<16x512xf32> to vector<16x128xf32>
    %201 = math.tanh %200 : vector<16x128xf32>
    %202 = vector.extract_strided_slice %178 {offsets = [0, 384], sizes = [16, 128], strides = [1, 1]} : vector<16x512xf32> to vector<16x128xf32>
    %203 = arith.negf %202 : vector<16x128xf32>
    %204 = math.exp %203 : vector<16x128xf32>
    %cst_57 = arith.constant 1.000000e+00 : f32
    %205 = vector.broadcast %cst_57 : f32 to vector<16x128xf32>
    %206 = arith.addf %205, %204 : vector<16x128xf32>
    %207 = arith.divf %205, %206 : vector<16x128xf32>
    %208 = arith.mulf %199, %165 : vector<16x128xf32>
    %209 = arith.mulf %193, %201 : vector<16x128xf32>
    %210 = arith.addf %208, %209 : vector<16x128xf32>
    %211 = math.tanh %210 : vector<16x128xf32>
    %212 = arith.mulf %207, %211 : vector<16x128xf32>
    %213 = vector.extract_strided_slice %187 {offsets = [0, 0], sizes = [16, 128], strides = [1, 1]} : vector<16x512xf32> to vector<16x128xf32>
    %214 = arith.negf %213 : vector<16x128xf32>
    %215 = math.exp %214 : vector<16x128xf32>
    %cst_58 = arith.constant 1.000000e+00 : f32
    %216 = vector.broadcast %cst_58 : f32 to vector<16x128xf32>
    %217 = arith.addf %216, %215 : vector<16x128xf32>
    %218 = arith.divf %216, %217 : vector<16x128xf32>
    %219 = vector.extract_strided_slice %187 {offsets = [0, 128], sizes = [16, 128], strides = [1, 1]} : vector<16x512xf32> to vector<16x128xf32>
    %220 = arith.negf %219 : vector<16x128xf32>
    %221 = math.exp %220 : vector<16x128xf32>
    %cst_59 = arith.constant 1.000000e+00 : f32
    %222 = vector.broadcast %cst_59 : f32 to vector<16x128xf32>
    %223 = arith.addf %222, %221 : vector<16x128xf32>
    %224 = arith.divf %222, %223 : vector<16x128xf32>
    %225 = vector.extract_strided_slice %187 {offsets = [0, 256], sizes = [16, 128], strides = [1, 1]} : vector<16x512xf32> to vector<16x128xf32>
    %226 = math.tanh %225 : vector<16x128xf32>
    %227 = vector.extract_strided_slice %187 {offsets = [0, 384], sizes = [16, 128], strides = [1, 1]} : vector<16x512xf32> to vector<16x128xf32>
    %228 = arith.negf %227 : vector<16x128xf32>
    %229 = math.exp %228 : vector<16x128xf32>
    %cst_60 = arith.constant 1.000000e+00 : f32
    %230 = vector.broadcast %cst_60 : f32 to vector<16x128xf32>
    %231 = arith.addf %230, %229 : vector<16x128xf32>
    %232 = arith.divf %230, %231 : vector<16x128xf32>
    %233 = arith.mulf %224, %167 : vector<16x128xf32>
    %234 = arith.mulf %218, %226 : vector<16x128xf32>
    %235 = arith.addf %233, %234 : vector<16x128xf32>
    %236 = math.tanh %235 : vector<16x128xf32>
    %237 = arith.mulf %232, %236 : vector<16x128xf32>
    %238 = arith.select %169, %212, %164 : vector<16x128xf32>
    %239 = arith.select %169, %210, %165 : vector<16x128xf32>
    %240 = arith.select %169, %237, %166 : vector<16x128xf32>
    %241 = arith.select %169, %235, %167 : vector<16x128xf32>
    %c3_i32 = arith.constant 3 : i32
    %242 = arith.addi %11, %c3_i32 : i32
    %c8_i32_61 = arith.constant 8 : i32
    %243 = arith.cmpi slt, %242, %c8_i32_61 : i32
    %244 = arith.index_cast %c3_i32 : i32 to index
    %c0_62 = arith.constant 0 : index
    %c0_63 = arith.constant 0 : index
    %245 = vector.load %arg1[%244, %c0_62, %c0_63] : memref<4x16x512xbf16, #tpu.memory_space<vmem>>, vector<1x16x512xbf16>
    %246 = vector.shape_cast %245 : vector<1x16x512xbf16> to vector<16x512xbf16>
    %247 = arith.extf %246 : vector<16x512xbf16> to vector<16x512xf32>
    %248 = vector.broadcast %8 : vector<1x512xf32> to vector<16x512xf32>
    %249 = arith.addf %247, %248 : vector<16x512xf32>
    %250 = arith.truncf %238 : vector<16x128xf32> to vector<16x128xbf16>
    %cst_64 = arith.constant dense<0.000000e+00> : vector<16x512xf32>
    %251 = tpu.matmul %250, %4, %cst_64 {dimension_numbers = #tpu.dot_dimension_numbers<[1], [0], [0], [1], [0, 0, 1, 1], [], []>} : vector<16x128xbf16>, vector<128x512xbf16>, vector<16x512xf32> -> vector<16x512xf32>
    %252 = arith.addf %249, %251 : vector<16x512xf32>
    %253 = arith.index_cast %c3_i32 : i32 to index
    %c0_65 = arith.constant 0 : index
    %c0_66 = arith.constant 0 : index
    %254 = vector.load %arg2[%253, %c0_65, %c0_66] : memref<4x16x512xbf16, #tpu.memory_space<vmem>>, vector<1x16x512xbf16>
    %255 = vector.shape_cast %254 : vector<1x16x512xbf16> to vector<16x512xbf16>
    %256 = arith.extf %255 : vector<16x512xbf16> to vector<16x512xf32>
    %257 = vector.broadcast %10 : vector<1x512xf32> to vector<16x512xf32>
    %258 = arith.addf %256, %257 : vector<16x512xf32>
    %259 = arith.truncf %240 : vector<16x128xf32> to vector<16x128xbf16>
    %cst_67 = arith.constant dense<0.000000e+00> : vector<16x512xf32>
    %260 = tpu.matmul %259, %6, %cst_67 {dimension_numbers = #tpu.dot_dimension_numbers<[1], [0], [0], [1], [0, 0, 1, 1], [], []>} : vector<16x128xbf16>, vector<128x512xbf16>, vector<16x512xf32> -> vector<16x512xf32>
    %261 = arith.addf %258, %260 : vector<16x512xf32>
    %262 = vector.extract_strided_slice %252 {offsets = [0, 0], sizes = [16, 128], strides = [1, 1]} : vector<16x512xf32> to vector<16x128xf32>
    %263 = arith.negf %262 : vector<16x128xf32>
    %264 = math.exp %263 : vector<16x128xf32>
    %cst_68 = arith.constant 1.000000e+00 : f32
    %265 = vector.broadcast %cst_68 : f32 to vector<16x128xf32>
    %266 = arith.addf %265, %264 : vector<16x128xf32>
    %267 = arith.divf %265, %266 : vector<16x128xf32>
    %268 = vector.extract_strided_slice %252 {offsets = [0, 128], sizes = [16, 128], strides = [1, 1]} : vector<16x512xf32> to vector<16x128xf32>
    %269 = arith.negf %268 : vector<16x128xf32>
    %270 = math.exp %269 : vector<16x128xf32>
    %cst_69 = arith.constant 1.000000e+00 : f32
    %271 = vector.broadcast %cst_69 : f32 to vector<16x128xf32>
    %272 = arith.addf %271, %270 : vector<16x128xf32>
    %273 = arith.divf %271, %272 : vector<16x128xf32>
    %274 = vector.extract_strided_slice %252 {offsets = [0, 256], sizes = [16, 128], strides = [1, 1]} : vector<16x512xf32> to vector<16x128xf32>
    %275 = math.tanh %274 : vector<16x128xf32>
    %276 = vector.extract_strided_slice %252 {offsets = [0, 384], sizes = [16, 128], strides = [1, 1]} : vector<16x512xf32> to vector<16x128xf32>
    %277 = arith.negf %276 : vector<16x128xf32>
    %278 = math.exp %277 : vector<16x128xf32>
    %cst_70 = arith.constant 1.000000e+00 : f32
    %279 = vector.broadcast %cst_70 : f32 to vector<16x128xf32>
    %280 = arith.addf %279, %278 : vector<16x128xf32>
    %281 = arith.divf %279, %280 : vector<16x128xf32>
    %282 = arith.mulf %273, %239 : vector<16x128xf32>
    %283 = arith.mulf %267, %275 : vector<16x128xf32>
    %284 = arith.addf %282, %283 : vector<16x128xf32>
    %285 = math.tanh %284 : vector<16x128xf32>
    %286 = arith.mulf %281, %285 : vector<16x128xf32>
    %287 = vector.extract_strided_slice %261 {offsets = [0, 0], sizes = [16, 128], strides = [1, 1]} : vector<16x512xf32> to vector<16x128xf32>
    %288 = arith.negf %287 : vector<16x128xf32>
    %289 = math.exp %288 : vector<16x128xf32>
    %cst_71 = arith.constant 1.000000e+00 : f32
    %290 = vector.broadcast %cst_71 : f32 to vector<16x128xf32>
    %291 = arith.addf %290, %289 : vector<16x128xf32>
    %292 = arith.divf %290, %291 : vector<16x128xf32>
    %293 = vector.extract_strided_slice %261 {offsets = [0, 128], sizes = [16, 128], strides = [1, 1]} : vector<16x512xf32> to vector<16x128xf32>
    %294 = arith.negf %293 : vector<16x128xf32>
    %295 = math.exp %294 : vector<16x128xf32>
    %cst_72 = arith.constant 1.000000e+00 : f32
    %296 = vector.broadcast %cst_72 : f32 to vector<16x128xf32>
    %297 = arith.addf %296, %295 : vector<16x128xf32>
    %298 = arith.divf %296, %297 : vector<16x128xf32>
    %299 = vector.extract_strided_slice %261 {offsets = [0, 256], sizes = [16, 128], strides = [1, 1]} : vector<16x512xf32> to vector<16x128xf32>
    %300 = math.tanh %299 : vector<16x128xf32>
    %301 = vector.extract_strided_slice %261 {offsets = [0, 384], sizes = [16, 128], strides = [1, 1]} : vector<16x512xf32> to vector<16x128xf32>
    %302 = arith.negf %301 : vector<16x128xf32>
    %303 = math.exp %302 : vector<16x128xf32>
    %cst_73 = arith.constant 1.000000e+00 : f32
    %304 = vector.broadcast %cst_73 : f32 to vector<16x128xf32>
    %305 = arith.addf %304, %303 : vector<16x128xf32>
    %306 = arith.divf %304, %305 : vector<16x128xf32>
    %307 = arith.mulf %298, %241 : vector<16x128xf32>
    %308 = arith.mulf %292, %300 : vector<16x128xf32>
    %309 = arith.addf %307, %308 : vector<16x128xf32>
    %310 = math.tanh %309 : vector<16x128xf32>
    %311 = arith.mulf %306, %310 : vector<16x128xf32>
    %312 = arith.select %243, %286, %238 : vector<16x128xf32>
    %313 = arith.select %243, %284, %239 : vector<16x128xf32>
    %314 = arith.select %243, %311, %240 : vector<16x128xf32>
    %315 = arith.select %243, %309, %241 : vector<16x128xf32>
    %c4_i32_74 = arith.constant 4 : i32
    %c0_75 = arith.constant 0 : index
    %c0_76 = arith.constant 0 : index
    %c0_77 = arith.constant 0 : index
    %316 = vector.load %arg5[%c0_75, %c0_76, %c0_77] : memref<2x16x128xf32, #tpu.memory_space<vmem>>, vector<1x16x128xf32>
    %317 = vector.shape_cast %316 : vector<1x16x128xf32> to vector<16x128xf32>
    %318 = vector.shape_cast %312 : vector<16x128xf32> to vector<1x16x128xf32>
    tpu.vector_store %arg5[%c0_75, %c0_76, %c0_77], %318 {strides = array<i32>} : memref<2x16x128xf32, #tpu.memory_space<vmem>>, vector<1x16x128xf32>,
    %c1_78 = arith.constant 1 : index
    %c0_79 = arith.constant 0 : index
    %c0_80 = arith.constant 0 : index
    %319 = vector.load %arg5[%c1_78, %c0_79, %c0_80] : memref<2x16x128xf32, #tpu.memory_space<vmem>>, vector<1x16x128xf32>
    %320 = vector.shape_cast %319 : vector<1x16x128xf32> to vector<16x128xf32>
    %321 = vector.shape_cast %314 : vector<16x128xf32> to vector<1x16x128xf32>
    tpu.vector_store %arg5[%c1_78, %c0_79, %c0_80], %321 {strides = array<i32>} : memref<2x16x128xf32, #tpu.memory_space<vmem>>, vector<1x16x128xf32>,
    %c0_81 = arith.constant 0 : index
    %c0_82 = arith.constant 0 : index
    %c0_83 = arith.constant 0 : index
    %322 = vector.load %arg6[%c0_81, %c0_82, %c0_83] : memref<2x16x128xf32, #tpu.memory_space<vmem>>, vector<1x16x128xf32>
    %323 = vector.shape_cast %322 : vector<1x16x128xf32> to vector<16x128xf32>
    %324 = vector.shape_cast %313 : vector<16x128xf32> to vector<1x16x128xf32>
    tpu.vector_store %arg6[%c0_81, %c0_82, %c0_83], %324 {strides = array<i32>} : memref<2x16x128xf32, #tpu.memory_space<vmem>>, vector<1x16x128xf32>,
    %c1_84 = arith.constant 1 : index
    %c0_85 = arith.constant 0 : index
    %c0_86 = arith.constant 0 : index
    %325 = vector.load %arg6[%c1_84, %c0_85, %c0_86] : memref<2x16x128xf32, #tpu.memory_space<vmem>>, vector<1x16x128xf32>
    %326 = vector.shape_cast %325 : vector<1x16x128xf32> to vector<16x128xf32>
    %327 = vector.shape_cast %315 : vector<16x128xf32> to vector<1x16x128xf32>
    tpu.vector_store %arg6[%c1_84, %c0_85, %c0_86], %327 {strides = array<i32>} : memref<2x16x128xf32, #tpu.memory_space<vmem>>, vector<1x16x128xf32>,
    return
  }
  func.func @transform_0(%arg0: i32) -> (i32, i32, i32) {
    %c0_i32 = arith.constant 0 : i32
    %c0_i32_0 = arith.constant 0 : i32
    %c0_i32_1 = arith.constant 0 : i32
    return %arg0, %c0_i32, %c0_i32_0 : i32, i32, i32
  }
  func.func @transform_1(%arg0: i32) -> (i32, i32, i32) {
    %c0_i32 = arith.constant 0 : i32
    %c0_i32_0 = arith.constant 0 : i32
    %c0_i32_1 = arith.constant 0 : i32
    return %arg0, %c0_i32, %c0_i32_0 : i32, i32, i32
  }
  func.func @transform_2(%arg0: i32) -> (i32, i32, i32) {
    %c0_i32 = arith.constant 0 : i32
    %c0_i32_0 = arith.constant 0 : i32
    %c0_i32_1 = arith.constant 0 : i32
    %c0_i32_2 = arith.constant 0 : i32
    return %c0_i32, %c0_i32_0, %c0_i32_1 : i32, i32, i32
  }
  func.func @transform_3(%arg0: i32) -> (i32, i32, i32) {
    %c0_i32 = arith.constant 0 : i32
    %c0_i32_0 = arith.constant 0 : i32
    %c0_i32_1 = arith.constant 0 : i32
    %c0_i32_2 = arith.constant 0 : i32
    return %c0_i32, %c0_i32_0, %c0_i32_1 : i32, i32, i32
  }
  func.func @transform_4(%arg0: i32) -> (i32, i32, i32) {
    %c0_i32 = arith.constant 0 : i32
    %c0_i32_0 = arith.constant 0 : i32
    %c0_i32_1 = arith.constant 0 : i32
    %c0_i32_2 = arith.constant 0 : i32
    return %c0_i32, %c0_i32_0, %c0_i32_1 : i32, i32, i32
  }
  func.func @transform_5(%arg0: i32) -> (i32, i32, i32) {
    %c0_i32 = arith.constant 0 : i32
    %c0_i32_0 = arith.constant 0 : i32
    %c0_i32_1 = arith.constant 0 : i32
    %c0_i32_2 = arith.constant 0 : i32
    return %c0_i32, %c0_i32_0, %c0_i32_1 : i32, i32, i32
  }
}

</mosaic_0001>

<bundles_post_ra>
// kernel: encoder_forward.1
= control target key start
LH: loop header
LB: loop body
LE: loop exit
PB: predicated region body
PF: predicated region fallthrough
CT: control target
= control target key end

     0   :  { %s2766_s18 = smov 0   ;;  %s4018_s0 = inlined_call_operand.vmem [shape: bf16[8,16,512], index: 0, kind: input, shape index: {}]   ;;  %s4019_s1 = inlined_call_operand.vmem [shape: bf16[8,16,512], index: 1, kind: input, shape index: {}]   ;;  %s4020_s2 = inlined_call_operand.vmem [shape: bf16[2,128,512], index: 2, kind: input, shape index: {}]   ;;  %s4021_s3 = inlined_call_operand.vmem [shape: f32[2,1,512], index: 3, kind: input, shape index: {}]   ;;  %s4022_s4 = inlined_call_operand.vmem [shape: f32[2,16,128], index: 4, kind: output, shape index: {0}]   ;;  %s4023_s5 = inlined_call_operand.vmem [shape: f32[2,16,128], index: 5, kind: output, shape index: {1}]  }
   0x1 LB: > { %s2107_s19 = sadd.s32 4294967295, %s2732_s18   ;;  %p2110_p0 = scmp.ge.s32.totalorder %s2732_s18, 1  ;;  %s2732_s18 = sphi %s2766_s18, %s16_s18  }
   0x2   : > { %p194_p1 = scmp.lt.s32.totalorder %s2732_s18, 3 }
   0x4   : > { %p195_p2 = pnand %p2110_p0, %p194_p1 }
   0x6   : > { %198 = sbr.rel (%p195_p2) target bundleno = 1144 (0x478), region = 36 }
   0xd   : > { %s2774_s20 = sshll.u32 %s2107_s19, 2  ;;  %p2117_p4 = scmp.ne.s32.totalorder %s2107_s19, 0 }
   0xe   : > { %p225_p3 = scmp.lt.s32.totalorder %s2774_s20, 7  ;;  %v2734_v0 = vmov (!%p2117_p4), 0.0  }
   0xf   : > { %242 = sbr.rel (%p2117_p4) target bundleno = 22 (0x16), region = 40  ;;  %243 = vst [vmem:[%s4022_s4] sm:$0xff] (!%p2117_p4), %v2734_v0  ;;  %244 = vst [vmem:[%s4022_s4 + $0x8] sm:$0xff] (!%p2117_p4), %v2734_v0 }
  0x10   : > { %s226_s21 = scalar_select %p225_p3, %s2774_s20, 7 }
  0x11   : > { %245 = vst [vmem:[%s4022_s4 + $0x10] sm:$0xff] (!%p2117_p4), %v2734_v0  ;;  %246 = vst [vmem:[%s4022_s4 + $0x18] sm:$0xff] (!%p2117_p4), %v2734_v0 }
  0x12   : > { %s2298_s22 = sshll.u32 %s226_s21, 5  ;;  %247 = vst [vmem:[%s4023_s5] sm:$0xff] (!%p2117_p4), %v2734_v0  ;;  %248 = vst [vmem:[%s4023_s5 + $0x8] sm:$0xff] (!%p2117_p4), %v2734_v0 }
  0x13   : > { %s2781_s25 = scalar_lea.vmem %s4018_s0, %s2298_s22  ;;  %s2786_s28 = scalar_lea.vmem %s4019_s1, %s2298_s22  ;;  %249 = vst [vmem:[%s4023_s5 + $0x10] sm:$0xff] (!%p2117_p4), %v2734_v0  ;;  %250 = vst [vmem:[%s4023_s5 + $0x18] sm:$0xff] (!%p2117_p4), %v2734_v0 }
  0x16 PF: > { %v2815_v1 = vld [vmem:[%s4020_s2 + $0x4] ss:$16 sps:$4 sm:$0xff]   ;;  %v2820_v2 = vld [vmem:[%s4020_s2] ss:$16 sps:$4 sm:$0xff]   ;;  %v4024_v3 = vmov 0   ;;  %v2992_v32 = vld [vmem:[%s4022_s4 + $0x8] sm:$0xff] }
  0x17   : > { %4092 = vst [vmem:[#allocation2_spill] sm:$0xff] %v2820_v2  ;;  %565 = vmatprep.mubr.bf16.mxu0 %v4024_v3  ;;  %608 = vmatprep.mubr.bf16.mxu1 %v4024_v3  ;;  %v2828_v4 = vld [vmem:[%s4020_s2 + $0x24] ss:$16 sps:$4 sm:$0xff]   ;;  %v2834_v5 = vld [vmem:[%s4020_s2 + $0x20] ss:$16 sps:$4 sm:$0xff]   ;;  %p330_p5 = scmp.lt.s32.totalorder %s2774_s20, 8 }
  0x18   : > { %533 = vmatprep.subr.bf16.mxu0 %v2815_v1  ;;  %4093 = vst [vmem:[#allocation3_spill] sm:$0xff] %v2828_v4  ;;  %4094 = vst [vmem:[#allocation4_spill] sm:$0xff] %v2834_v5  ;;  %v2840_v6 = vld [vmem:[%s4020_s2 + $0x44] ss:$16 sps:$4 sm:$0xff]   ;;  %v2845_v7 = vld [vmem:[%s4020_s2 + $0xc] ss:$16 sps:$4 sm:$0xff]  }
  0x19   : > { %534 = vmatpush1.bf16.msra.mxu0 %v2820_v2  ;;  %4095 = vst [vmem:[#allocation5_spill] sm:$0xff] %v2840_v6  ;;  %v2850_v8 = vld [vmem:[%s4020_s2 + $0x8] ss:$16 sps:$4 sm:$0xff]   ;;  %v2856_v9 = vld [vmem:[%s4020_s2 + $0x40] ss:$16 sps:$4 sm:$0xff]   ;;  %576 = vmatprep.subr.bf16.mxu1 %v2845_v7  ;;  %s1030_s24 = sadd.s32 1, %s2774_s20 }
  0x1a   : > { %535 = vmatprep.subr.bf16.mxu0 %v2828_v4  ;;  %4096 = vst [vmem:[#allocation6_spill] sm:$0xff] %v2850_v8  ;;  %4097 = vst [vmem:[#allocation7_spill] sm:$0xff] %v2856_v9  ;;  %v2863_v10 = vld [vmem:[%s4020_s2 + $0x64] ss:$16 sps:$4 sm:$0xff]   ;;  %577 = vmatpush1.bf16.msra.mxu1 %v2850_v8  ;;  %v2869_v11 = vld [vmem:[%s4020_s2 + $0x2c] ss:$16 sps:$4 sm:$0xff]  }
  0x1b   : > { %4098 = vst [vmem:[#allocation8_spill] sm:$0xff] %v2863_v10  ;;  %4099 = vst [vmem:[#allocation9_spill] sm:$0xff] %v2869_v11  ;;  %v2874_v12 = vld [vmem:[%s4020_s2 + $0x28] ss:$16 sps:$4 sm:$0xff]   ;;  %578 = vmatprep.subr.bf16.mxu1 %v2869_v11  ;;  %v2881_v13 = vld [vmem:[%s4020_s2 + $0x60] ss:$16 sps:$4 sm:$0xff]  }
  0x1c   : > { %4100 = vst [vmem:[#allocation10_spill] sm:$0xff] %v2874_v12  ;;  %4101 = vst [vmem:[#allocation11_spill] sm:$0xff] %v2881_v13  ;;  %v2886_v14 = vld [vmem:[%s4020_s2 + $0x84] ss:$16 sps:$4 sm:$0xff]   ;;  %v2891_v15 = vld [vmem:[%s4020_s2 + $0x4c] ss:$16 sps:$4 sm:$0xff]  }
  0x1d   : > { %536 = vmatpush1.bf16.msra.mxu0 %v2834_v5  ;;  %4102 = vst [vmem:[#allocation12_spill] sm:$0xff] %v2886_v14  ;;  %4103 = vst [vmem:[#allocation13_spill] sm:$0xff] %v2891_v15  ;;  %v2898_v16 = vld [vmem:[%s4020_s2 + $0x48] ss:$16 sps:$4 sm:$0xff]   ;;  %v2904_v17 = vld [vmem:[%s4020_s2 + $0x6c] ss:$16 sps:$4 sm:$0xff]  }
  0x1e   : > { %537 = vmatprep.subr.bf16.mxu0 %v2840_v6  ;;  %579 = vmatpush1.bf16.msra.mxu1 %v2874_v12  ;;  %4104 = vst [vmem:[#allocation14_spill] sm:$0xff] %v2898_v16  ;;  %4105 = vst [vmem:[#allocation15_spill] sm:$0xff] %v2904_v17  ;;  %v2910_v18 = vld [vmem:[%s4020_s2 + $0x80] ss:$16 sps:$4 sm:$0xff]   ;;  %v2916_v19 = vld [vmem:[%s4020_s2 + $0xa4] ss:$16 sps:$4 sm:$0xff]  }
  0x1f   : > { %580 = vmatprep.subr.bf16.mxu1 %v2891_v15  ;;  %4106 = vst [vmem:[#allocation16_spill] sm:$0xff] %v2910_v18  ;;  %4107 = vst [vmem:[#allocation17_spill] sm:$0xff] %v2916_v19  ;;  %v2922_v20 = vld [vmem:[%s4020_s2 + $0x68] ss:$16 sps:$4 sm:$0xff]   ;;  %v2928_v21 = vld [vmem:[%s4020_s2 + $0x8c] ss:$16 sps:$4 sm:$0xff]  }
  0x20   : > { %4108 = vst [vmem:[#allocation18_spill] sm:$0xff] %v2922_v20  ;;  %4109 = vst [vmem:[#allocation19_spill] sm:$0xff] %v2928_v21  ;;  %v2934_v22 = vld [vmem:[%s4020_s2 + $0xa0] ss:$16 sps:$4 sm:$0xff]   ;;  %v2940_v23 = vld [vmem:[%s4020_s2 + $0xc4] ss:$16 sps:$4 sm:$0xff]  }
  0x21   : > { %538 = vmatpush1.bf16.msra.mxu0 %v2856_v9  ;;  %4110 = vst [vmem:[#allocation20_spill] sm:$0xff] %v2934_v22  ;;  %4111 = vst [vmem:[#allocation21_spill] sm:$0xff] %v2940_v23  ;;  %v2946_v24 = vld [vmem:[%s4020_s2 + $0x88] ss:$16 sps:$4 sm:$0xff]   ;;  %v2952_v25 = vld [vmem:[%s4020_s2 + $0xac] ss:$16 sps:$4 sm:$0xff]  }
  0x22   : > { %539 = vmatprep.subr.bf16.mxu0 %v2863_v10  ;;  %581 = vmatpush1.bf16.msra.mxu1 %v2898_v16  ;;  %4112 = vst [vmem:[#allocation22_spill] sm:$0xff] %v2946_v24  ;;  %4113 = vst [vmem:[#allocation23_spill] sm:$0xff] %v2952_v25  ;;  %v2957_v26 = vld [vmem:[%s4020_s2 + $0xc0] ss:$16 sps:$4 sm:$0xff]   ;;  %v2963_v27 = vld [vmem:[%s4020_s2 + $0xe4] ss:$16 sps:$4 sm:$0xff]  }
  0x23   : > { %582 = vmatprep.subr.bf16.mxu1 %v2904_v17  ;;  %4114 = vst [vmem:[#allocation24_spill] sm:$0xff] %v2957_v26  ;;  %4115 = vst [vmem:[#allocation25_spill] sm:$0xff] %v2963_v27  ;;  %v2970_v28 = vld [vmem:[%s4020_s2 + $0xa8] ss:$16 sps:$4 sm:$0xff]   ;;  %v2975_v29 = vld [vmem:[%s4020_s2 + $0xe0] ss:$16 sps:$4 sm:$0xff]  }
  0x24   : > { %4116 = vst [vmem:[#allocation26_spill] sm:$0xff] %v2970_v28  ;;  %4117 = vst [vmem:[#allocation27_spill] sm:$0xff] %v2975_v29  ;;  %v2981_v30 = vld [vmem:[%s4020_s2 + $0xcc] ss:$16 sps:$4 sm:$0xff]   ;;  %v2986_v31 = vld [vmem:[%s4022_s4] sm:$0xff]  ;;  %p3467_p6 = scmp.lt.s32.totalorder %s1030_s24, 8 }
  0x25   : > { %540 = vmatpush1.bf16.msra.mxu0 %v2881_v13  ;;  %4118 = vst [vmem:[#allocation28_spill] sm:$0xff] %v2981_v30  ;;  %v2998_v33 = vld [vmem:[%s4020_s2 + $0x104] ss:$16 sps:$4 sm:$0xff]   ;;  %v3004_v34 = vld [vmem:[%s4020_s2 + $0xc8] ss:$16 sps:$4 sm:$0xff]   ;;  %v372_v36 = vpack.c.bf16 %v2992_v32, %v2986_v31  ;;  %s1371_s6 = sadd.s32 2, %s2774_s20 }
  0x26   : > { %541 = vmatprep.subr.bf16.mxu0 %v2886_v14  ;;  %583 = vmatpush1.bf16.msra.mxu1 %v2922_v20  ;;  %4119 = vst [vmem:[#allocation29_spill] sm:$0xff] %v2998_v33  ;;  %4120 = vst [vmem:[#allocation30_spill] sm:$0xff] %v3004_v34  ;;  %v3010_v35 = vld [vmem:[%s4020_s2 + $0xec] ss:$16 sps:$4 sm:$0xff]   ;;  %v3017_v37 = vld [vmem:[%s4020_s2 + $0x100] ss:$16 sps:$4 sm:$0xff]  }
  0x27   : > { %584 = vmatprep.subr.bf16.mxu1 %v2928_v21  ;;  %4121 = vst [vmem:[#allocation31_spill] sm:$0xff] %v3010_v35  ;;  %v3023_v38 = vld [vmem:[%s4020_s2 + $0x124] ss:$16 sps:$4 sm:$0xff]   ;;  %v3030_v39 = vld [vmem:[%s4020_s2 + $0xe8] ss:$16 sps:$4 sm:$0xff]   ;;  %p3834_p7 = scmp.lt.s32.totalorder %s1371_s6, 8 }
  0x28   : > { %4122 = vst [vmem:[#allocation32_spill] sm:$0xff] %v3030_v39  ;;  %v3036_v40 = vld [vmem:[%s4020_s2 + $0x10c] ss:$16 sps:$4 sm:$0xff]   ;;  %v3042_v41 = vld [vmem:[%s4020_s2 + $0x120] ss:$16 sps:$4 sm:$0xff]  }
  0x29   : > { %542 = vmatpush1.bf16.msra.mxu0 %v2910_v18  ;;  %4123 = vst [vmem:[#allocation33_spill] sm:$0xff] %v3036_v40  ;;  %v3049_v42 = vld [vmem:[%s4020_s2 + $0x144] ss:$16 sps:$4 sm:$0xff]   ;;  %v3055_v43 = vld [vmem:[%s4020_s2 + $0x108] ss:$16 sps:$4 sm:$0xff]  }
  0x2a   : > { %543 = vmatprep.subr.bf16.mxu0 %v2916_v19  ;;  %585 = vmatpush1.bf16.msra.mxu1 %v2946_v24  ;;  %v3061_v44 = vld [vmem:[%s4020_s2 + $0x12c] ss:$16 sps:$4 sm:$0xff]   ;;  %v3067_v45 = vld [vmem:[%s4020_s2 + $0x140] ss:$16 sps:$4 sm:$0xff]   ;;  %v3072_v46 = vld [vmem:[%s4020_s2 + $0x164] ss:$16 sps:$4 sm:$0xff]  }
  0x2b   : > { %586 = vmatprep.subr.bf16.mxu1 %v2952_v25  ;;  %v3079_v47 = vld [vmem:[%s4020_s2 + $0x128] ss:$16 sps:$4 sm:$0xff]   ;;  %v3085_v48 = vld [vmem:[%s4020_s2 + $0x14c] ss:$16 sps:$4 sm:$0xff]   ;;  %v3092_v49 = vld [vmem:[%s4020_s2 + $0x160] ss:$16 sps:$4 sm:$0xff]  }
  0x2c   : > { %v3098_v50 = vld [vmem:[%s4020_s2 + $0x184] ss:$16 sps:$4 sm:$0xff]   ;;  %v3104_v51 = vld [vmem:[%s4020_s2 + $0x148] ss:$16 sps:$4 sm:$0xff]   ;;  %v3110_v52 = vld [vmem:[%s4020_s2 + $0x16c] ss:$16 sps:$4 sm:$0xff]  }
  0x2d   : > { %544 = vmatpush1.bf16.msra.mxu0 %v2934_v22  ;;  %v3116_v53 = vld [vmem:[%s4020_s2 + $0x180] ss:$16 sps:$4 sm:$0xff]   ;;  %v3122_v54 = vld [vmem:[%s4020_s2 + $0x1a4] ss:$16 sps:$4 sm:$0xff]   ;;  %v3128_v55 = vld [vmem:[%s4020_s2 + $0x168] ss:$16 sps:$4 sm:$0xff]  }
  0x2e   : > { %545 = vmatprep.subr.bf16.mxu0 %v2940_v23  ;;  %587 = vmatpush1.bf16.msra.mxu1 %v2970_v28  ;;  %v3134_v56 = vld [vmem:[%s4020_s2 + $0x18c] ss:$16 sps:$4 sm:$0xff]   ;;  %v3140_v57 = vld [vmem:[%s4020_s2 + $0x1a0] ss:$16 sps:$4 sm:$0xff]   ;;  %v3146_v58 = vld [vmem:[%s4020_s2 + $0x1c4] ss:$16 sps:$4 sm:$0xff]  }
  0x2f   : > { %588 = vmatprep.subr.bf16.mxu1 %v2981_v30  ;;  %4124 = vst [vmem:[#allocation34_spill] sm:$0xff] %v3140_v57  ;;  %4125 = vst [vmem:[#allocation35_spill] sm:$0xff] %v3146_v58  ;;  %v3152_v59 = vld [vmem:[%s4020_s2 + $0x188] ss:$16 sps:$4 sm:$0xff]   ;;  %v3158_v60 = vld [vmem:[%s4020_s2 + $0x1ac] ss:$16 sps:$4 sm:$0xff]  }
  0x30   : > { %4126 = vst [vmem:[#allocation36_spill] sm:$0xff] %v3158_v60  ;;  %v3164_v61 = vld [vmem:[%s4020_s2 + $0x1c0] ss:$16 sps:$4 sm:$0xff]   ;;  %v3170_v62 = vld [vmem:[%s4020_s2 + $0x1e4] ss:$16 sps:$4 sm:$0xff]  }
  0x31   : > { %546 = vmatpush1.bf16.msra.mxu0 %v2957_v26  ;;  %4127 = vst [vmem:[#allocation37_spill] sm:$0xff] %v3164_v61  ;;  %4128 = vst [vmem:[#allocation38_spill] sm:$0xff] %v3170_v62  ;;  %v3176_v63 = vld [vmem:[%s4020_s2 + $0x1a8] ss:$16 sps:$4 sm:$0xff]   ;;  %v3182_v0 = vld [vmem:[%s4020_s2 + $0x1cc] ss:$16 sps:$4 sm:$0xff]  }
  0x32   : > { %547 = vmatprep.subr.bf16.mxu0 %v2963_v27  ;;  %589 = vmatpush1.bf16.msra.mxu1 %v3004_v34  ;;  %4129 = vst [vmem:[#allocation39_spill] sm:$0xff] %v3182_v0  ;;  %s1019_s13 = scalar_select %p330_p5, 1, 0 }
  0x33   : > { %590 = vmatprep.subr.bf16.mxu1 %v3010_v35  ;;  %s1360_s27 = scalar_select %p3467_p6, 1, 0 }
  0x34   : > { %s1701_s8 = scalar_select %p3834_p7, 1, 0 }
  0x35   : > { %548 = vmatpush1.bf16.msra.mxu0 %v2975_v29 }
  0x36   : > { %829 = vmatprep.subr.bf16.mxu0 %v2998_v33  ;;  %591 = vmatpush1.bf16.msra.mxu1 %v3030_v39 }
  0x37   : > { %872 = vmatprep.subr.bf16.mxu1 %v3036_v40 }
  0x38   : > { %566 = vmatmul.mubr.bf16.vlgmr.msra.gmra.mrb[0].mxu0 %v372_v36 }
  0x39   : > { %830 = vmatpush1.bf16.msra.mxu0 %v3017_v37  ;;  %861 = vmatprep.mubr.bf16.mxu0 %v4024_v3 }
  0x3a   : > { %831 = vmatprep.subr.bf16.mxu0 %v3023_v38  ;;  %609 = vmatmul.mubr.bf16.vlgmr.msra.gmra.mrb[0].mxu1 %v372_v36  ;;  %v3188_v36 = vld [vmem:[%s4020_s2 + $0x1e0] ss:$16 sps:$4 sm:$0xff]  }
  0x3b   : > { %873 = vmatpush1.bf16.msra.mxu1 %v3055_v43  ;;  %904 = vmatprep.mubr.bf16.mxu1 %v4024_v3  ;;  %v3193_v3 = vld [vmem:[%s4022_s4 + $0x10] sm:$0xff] }
  0x3c   : > { %874 = vmatprep.subr.bf16.mxu1 %v3061_v44 }
  0x3d   : > { %832 = vmatpush1.bf16.msra.mxu0 %v3042_v41 }
  0x3e   : > { %833 = vmatprep.subr.bf16.mxu0 %v3049_v42 }
  0x3f   : > { %875 = vmatpush1.bf16.msra.mxu1 %v3079_v47 }
  0x40   : > { %876 = vmatprep.subr.bf16.mxu1 %v3085_v48 }
  0x41   : > { %834 = vmatpush1.bf16.msra.mxu0 %v3067_v45 }
  0x42   : > { %835 = vmatprep.subr.bf16.mxu0 %v3072_v46 }
  0x43   : > { %877 = vmatpush1.bf16.msra.mxu1 %v3104_v51 }
  0x44   : > { %878 = vmatprep.subr.bf16.mxu1 %v3110_v52 }
  0x45   : > { %836 = vmatpush1.bf16.msra.mxu0 %v3092_v49 }
  0x46   : > { %837 = vmatprep.subr.bf16.mxu0 %v3098_v50 }
  0x47   : > { %879 = vmatpush1.bf16.msra.mxu1 %v3128_v55 }
  0x48   : > { %880 = vmatprep.subr.bf16.mxu1 %v3134_v56 }
  0x49   : > { %838 = vmatpush1.bf16.msra.mxu0 %v3116_v53 }
  0x4a   : > { %839 = vmatprep.subr.bf16.mxu0 %v3122_v54 }
  0x4b   : > { %881 = vmatpush1.bf16.msra.mxu1 %v3152_v59 }
  0x4c   : > { %882 = vmatprep.subr.bf16.mxu1 %v3158_v60 }
  0x4d   : > { %840 = vmatpush1.bf16.msra.mxu0 %v3140_v57  ;;  %v3211_v57 = vld [vmem:[%s4020_s2 + $0x1ec] ss:$16 sps:$4 sm:$0xff]  }
  0x4e   : > { %841 = vmatprep.subr.bf16.mxu0 %v3146_v58  ;;  %v3198_v58 = vld [vmem:[%s4022_s4 + $0x18] sm:$0xff] }
  0x4f   : > { %883 = vmatpush1.bf16.msra.mxu1 %v3176_v63  ;;  %v668_v60 = vpack.c.bf16 %v3198_v58, %v3193_v3 }
  0x50   : > { %884 = vmatprep.subr.bf16.mxu1 %v3182_v0  ;;  %v4130_v0 = vmov 0  }
  0x51   : > { %842 = vmatpush1.bf16.msra.mxu0 %v3164_v61  ;;  %v3205_v61 = vld [vmem:[%s4020_s2 + $0x1c8] ss:$16 sps:$4 sm:$0xff]  }
  0x52   : > { %843 = vmatprep.subr.bf16.mxu0 %v3170_v62  ;;  %v3220_v62 = vld [vmem:[%s4020_s2 + $0x1e8] ss:$16 sps:$4 sm:$0xff]  }
  0x53   : > { %885 = vmatpush1.bf16.msra.mxu1 %v3205_v61 }
  0x54   : > { %886 = vmatprep.subr.bf16.mxu1 %v3211_v57 }
  0x55   : > { %844 = vmatpush1.bf16.msra.mxu0 %v3188_v36 }
  0x56   : > { %1054 = vmatprep.subr.bf16.mxu0 %v2815_v1 }
  0x57   : > { %887 = vmatpush1.bf16.msra.mxu1 %v3220_v62 }
  0x58   : > { %862 = vmatmul.mubr.bf16.vlgmr.msra.gmra.mrb[4].mxu0 %v668_v60  ;;  %1097 = vmatprep.subr.bf16.mxu1 %v2845_v7 }
  0x59   : > { %1055 = vmatpush1.bf16.msra.mxu0 %v2820_v2  ;;  %1086 = vmatprep.mubr.bf16.mxu0 %v4130_v0 }
  0x5a   : > { %1056 = vmatprep.subr.bf16.mxu0 %v2828_v4  ;;  %905 = vmatmul.mubr.bf16.vlgmr.msra.gmra.mrb[4].mxu1 %v668_v60  ;;  %v344_v60 = vlaneseq }
  0x5b   : > { %1098 = vmatpush1.bf16.msra.mxu1 %v2850_v8  ;;  %1129 = vmatprep.mubr.bf16.mxu1 %v4130_v0 }
  0x5c   : > { %1099 = vmatprep.subr.bf16.mxu1 %v2869_v11 }
  0x5d   : > { %1057 = vmatpush1.bf16.msra.mxu0 %v2834_v5 }
  0x5e   : > { %1058 = vmatprep.subr.bf16.mxu0 %v2840_v6 }
  0x5f   : > { %1100 = vmatpush1.bf16.msra.mxu1 %v2874_v12 }
  0x60   : > { %1101 = vmatprep.subr.bf16.mxu1 %v2891_v15 }
  0x61   : > { %1059 = vmatpush1.bf16.msra.mxu0 %v2856_v9 }
  0x62   : > { %1060 = vmatprep.subr.bf16.mxu0 %v2863_v10 }
  0x63   : > { %1102 = vmatpush1.bf16.msra.mxu1 %v2898_v16 }
  0x64   : > { %1103 = vmatprep.subr.bf16.mxu1 %v2904_v17 }
  0x65   : > { %1061 = vmatpush1.bf16.msra.mxu0 %v2881_v13 }
  0x66   : > { %1062 = vmatprep.subr.bf16.mxu0 %v2886_v14 }
  0x67   : > { %1104 = vmatpush1.bf16.msra.mxu1 %v2922_v20 }
  0x68   : > { %1105 = vmatprep.subr.bf16.mxu1 %v2928_v21  ;;  %v334_v21 = vld [vmem:[%s2781_s25 + $0x18] sm:$0xff] }
  0x69   : > { %1063 = vmatpush1.bf16.msra.mxu0 %v2910_v18  ;;  %v342_v17 = vunpack.c.h.bf16 %v334_v21  ;;  %v341_v12 = vunpack.c.l.bf16 %v334_v21 }
  0x6a   : > { %1064 = vmatprep.subr.bf16.mxu0 %v2916_v19 }
  0x6b   : > { %1106 = vmatpush1.bf16.msra.mxu1 %v2946_v24 }
  0x6c   : > { %1107 = vmatprep.subr.bf16.mxu1 %v2952_v25  ;;  %v332_v25 = vld [vmem:[%s2781_s25 + $0x8] sm:$0xff] }
  0x6d   : > { %1065 = vmatpush1.bf16.msra.mxu0 %v2934_v22  ;;  %v338_v14 = vunpack.c.h.bf16 %v332_v25  ;;  %v337_v16 = vunpack.c.l.bf16 %v332_v25 }
  0x6e   : > { %1066 = vmatprep.subr.bf16.mxu0 %v2940_v23 }
  0x6f   : > { %1108 = vmatpush1.bf16.msra.mxu1 %v2970_v28 }
  0x70   : > { %1109 = vmatprep.subr.bf16.mxu1 %v2981_v30  ;;  %v333_v30 = vld [vmem:[%s2781_s25 + $0x10] sm:$0xff] }
  0x71   : > { %1067 = vmatpush1.bf16.msra.mxu0 %v2957_v26  ;;  %v3260_v26 = vshrl.u32 %v344_v60, 7  ;;  %v339_v23 = vunpack.c.l.bf16 %v333_v30  ;;  %v340_v22 = vunpack.c.h.bf16 %v333_v30 }
  0x72   : > { %1068 = vmatprep.subr.bf16.mxu0 %v2963_v27 }
  0x73   : > { %1110 = vmatpush1.bf16.msra.mxu1 %v3004_v34  ;;  %v4049_v27 = vsub.s32 0, %v3260_v26  ;;  %v331_v34 = vld [vmem:[%s2781_s25] sm:$0xff]  ;;  %v4061_v28 = vsub.s32 3, %v3260_v26  ;;  %v4064_v18 = vsub.s32 2, %v3260_v26 }
  0x74   : > { %1111 = vmatprep.subr.bf16.mxu1 %v3010_v35  ;;  %v335_v35 = vunpack.c.l.bf16 %v331_v34 }
  0x75   : > { %1069 = vmatpush1.bf16.msra.mxu0 %v2975_v29  ;;  %v316_v29 = vld [vmem:[%s4021_s3] sm:$0xf] }
  0x76   : > { %1170 = vmatprep.subr.bf16.mxu0 %v2998_v33  ;;  %v4051_v33 = vsub.s32 1, %v3260_v26 }
  0x77   : > { %1112 = vmatpush1.bf16.msra.mxu1 %v3030_v39  ;;  %v3271_v39 = vrot.slane %v316_v29, %v4049_v27 }
  0x78   : > { %1213 = vmatprep.subr.bf16.mxu1 %v3036_v40  ;;  %v336_v40 = vunpack.c.h.bf16 %v331_v34  ;;  %v3275_v60 = vrot.slane %v316_v29, %v4051_v33  ;;  %v3286_v34 = vrot.slane %v316_v29, %v4061_v28 }
  0x79   : > { %4131 = vst [vmem:[#allocation40_spill] sm:$0xff] %v3271_v39  ;;  %v364_v19 = vadd.f32 %v3271_v39, %v335_v35  ;;  %v368_v27 = vadd.f32 %v3271_v39, %v339_v23 }
  0x7a   : > { %4132 = vst [vmem:[#allocation41_spill] sm:$0xff] %v3275_v60  ;;  %v365_v24 = vadd.f32 %v3275_v60, %v336_v40  ;;  %4133 = vst [vmem:[#allocation42_spill] sm:$0xff] %v3286_v34  ;;  %v369_v20 = vadd.f32 %v3275_v60, %v340_v22  ;;  %v3291_v40 = vrot.slane %v316_v29, %v4064_v18 }
  0x7b   : > { %v367_v15 = vadd.f32 %v3286_v34, %v338_v14 }
  0x7c   : > { %4134 = vst [vmem:[#allocation43_spill] sm:$0xff] %v3291_v40  ;;  %v366_v25 = vadd.f32 %v3291_v40, %v337_v16 }
 0x10b   : > { %v567_v33 = vpop.f32.mrb[0].mxu0 }
 0x10c   : > { %v619_v13 = vadd.f32 %v567_v33, %v364_v19  ;;  %v569_v30 = vpop.f32.mrb[1].mxu0  ;;  %v371_v33 = vadd.f32 %v3286_v34, %v342_v17  ;;  %v630_v34 = vld [vmem:[%s2786_s28 + $0x18] sm:$0xff] }
 0x10d   : > { %v620_v10 = vadd.f32 %v569_v30, %v365_v24  ;;  %v571_v35 = vpop.f32.mrb[2].mxu0  ;;  %v610_v19 = vpop.f32.mrb[0].mxu1  ;;  %v637_v8 = vunpack.c.l.bf16 %v630_v34  ;;  %v638_v2 = vunpack.c.h.bf16 %v630_v34 }
 0x10e   : > { %v2220_v9 = vmul.f32 -1.442695, %v619_v13  ;;  %v623_v23 = vadd.f32 %v571_v35, %v368_v27  ;;  %v573_v39 = vpop.f32.mrb[3].mxu0  ;;  %v612_v30 = vpop.f32.mrb[1].mxu1  ;;  %v370_v27 = vadd.f32 %v3291_v40, %v341_v12 }
 0x10f   : > { %v2222_v28 = vmul.f32 -1.442695, %v620_v10  ;;  %v624_v6 = vadd.f32 %v573_v39, %v369_v20  ;;  %v622_v29 = vadd.f32 %v612_v30, %v367_v15  ;;  %v614_v13 = vpop.f32.mrb[2].mxu1  ;;  %v621_v20 = vadd.f32 %v610_v19, %v366_v25  ;;  %v627_v19 = vld [vmem:[%s2786_s28] sm:$0xff] }
 0x110   : > { %2406 = vpow2.f32 %v2220_v9  ;;  %v2221_v22 = vmul.f32 -1.442695, %v623_v23  ;;  %v616_v14 = vpop.f32.mrb[3].mxu1  ;;  %v625_v9 = vadd.f32 %v614_v13, %v370_v27  ;;  %v631_v30 = vunpack.c.l.bf16 %v627_v19 }
 0x111   : > { %2408 = vpow2.f32 %v2222_v28  ;;  %v2223_v24 = vmul.f32 -1.442695, %v624_v6  ;;  %v626_v10 = vadd.f32 %v616_v14, %v371_v33  ;;  %v2224_v21 = vmul.f32 -1.442695, %v622_v29  ;;  %v629_v33 = vld [vmem:[%s2786_s28 + $0x10] sm:$0xff] }
 0x112   : > { %2410 = vpow2.f32 %v2221_v22  ;;  %v2150_v22 = vld [vmem:[%s4021_s3 + $0x4] sm:$0xf]  ;;  %v4135_v29 = vsub.s32 0, %v3260_v26  ;;  %v632_v27 = vunpack.c.h.bf16 %v627_v19  ;;  %v4137_v14 = vsub.s32 1, %v3260_v26 }
 0x113   : > { %2412 = vpow2.f32 %v2223_v24  ;;  %v2225_v39 = vmul.f32 -1.442695, %v626_v10 }
 0x114   : > { %2414 = vtanh.f32 %v621_v20  ;;  %v3305_v13 = vrot.slane %v2150_v22, %v4135_v29  ;;  %v3309_v10 = vrot.slane %v2150_v22, %v4137_v14 }
 0x115   : > { %2416 = vpow2.f32 %v2224_v21  ;;  %v635_v21 = vunpack.c.l.bf16 %v629_v33 }
 0x116   : > { %2418 = vtanh.f32 %v625_v9  ;;  %4136 = vst [vmem:[#allocation44_spill] sm:$0xff] %v3305_v13  ;;  %4138 = vst [vmem:[#allocation45_spill] sm:$0xff] %v3309_v10  ;;  %v636_v9 = vunpack.c.h.bf16 %v629_v33  ;;  %v660_v19 = vadd.f32 %v3305_v13, %v631_v30  ;;  %v661_v33 = vadd.f32 %v3309_v10, %v632_v27 }
 0x117   : > { %2420 = vpow2.f32 %v2225_v39  ;;  %v664_v18 = vadd.f32 %v3305_v13, %v635_v21 }
 0x118   : > { %v665_v40 = vadd.f32 %v3309_v10, %v636_v9 }
 0x11a   : > { %v2407_v17 = vpop.eup %2406 }
 0x11b   : > { %v2409_v6 = vpop.eup %2408  ;;  %v929_v16 = vadd.f32 1.0, %v2407_v17  ;;  %v322_v17 = vld [vmem:[%s4023_s5] sm:$0xff] }
 0x11c   : > { %v2411_v15 = vpop.eup %2410  ;;  %v941_v28 = vadd.f32 1.0, %v2409_v6  ;;  %v1020_v6 = vstv %s1019_s13 }
 0x11d   : > { %v2413_v35 = vpop.eup %2412  ;;  %2422 = vrcp.f32 %v929_v16  ;;  %v930_v12 = vadd.f32 1.0, %v2411_v15  ;;  %vm3323_vm0 = vcmp.eq.s32.totalorder %v1020_v6, 1  ;;  %v4142_v6 = vsub.s32 2, %v3260_v26 }
 0x11e   : > { %2424 = vrcp.f32 %v941_v28  ;;  %v942_v23 = vadd.f32 1.0, %v2413_v35  ;;  %v2415_v24 = vpop.eup %2414  ;;  %v628_v28 = vld [vmem:[%s2786_s28 + $0x8] sm:$0xff] }
 0x11f   : > { %2426 = vrcp.f32 %v930_v12  ;;  %v2417_v25 = vpop.eup %2416  ;;  %v323_v12 = vld [vmem:[%s4023_s5 + $0x8] sm:$0xff]  ;;  %v634_v4 = vunpack.c.h.bf16 %v628_v28  ;;  %v633_v21 = vunpack.c.l.bf16 %v628_v28  ;;  %v3333_v10 = vrot.slane %v2150_v22, %v4142_v6 }
 0x120   : > { %2428 = vrcp.f32 %v942_v23  ;;  %v2419_v20 = vpop.eup %2418  ;;  %v955_v15 = vadd.f32 1.0, %v2417_v25  ;;  %v4154_v25 = vld [vmem:[#allocation10_spill] sm:$0xff] }
 0x121   : > { %v2421_v39 = vpop.eup %2420 }
 0x122   : > { %v956_v11 = vadd.f32 1.0, %v2421_v39  ;;  %2430 = vrcp.f32 %v955_v15 }
 0x127   : > { %v2423_v16 = vpop.eup %2422 }
 0x128   : > { %v2425_v35 = vpop.eup %2424  ;;  %v963_v23 = vmul.f32 %v2423_v16, %v2415_v24  ;;  %v4141_v24 = vsub.s32 3, %v3260_v26 }
 0x129   : > { %v2427_v29 = vpop.eup %2426  ;;  %v961_v14 = vmul.f32 %v2425_v35, %v322_v17 }
 0x12a   : > { %v2429_v60 = vpop.eup %2428  ;;  %v964_v5 = vmul.f32 %v2427_v29, %v2419_v20  ;;  %v3329_v30 = vrot.slane %v2150_v22, %v4141_v24 }
 0x12b   : > { %v962_v27 = vmul.f32 %v2429_v60, %v323_v12  ;;  %v965_v16 = vadd.f32 %v963_v23, %v961_v14  ;;  %v863_v35 = vpop.f32.mrb[4].mxu0 }
 0x12c   : > { %v915_v13 = vadd.f32 %v863_v35, %v660_v19  ;;  %v865_v9 = vpop.f32.mrb[5].mxu0  ;;  %v663_v23 = vadd.f32 %v3329_v30, %v634_v4 }
 0x12d   : > { %2432 = vtanh.f32 %v965_v16  ;;  %v966_v20 = vadd.f32 %v964_v5, %v962_v27  ;;  %v916_v39 = vadd.f32 %v865_v9, %v661_v33  ;;  %v867_v29 = vpop.f32.mrb[6].mxu0  ;;  %v3337_v24 = vsel %vm3323_vm0, %v965_v16, %v322_v17  ;;  %v906_v19 = vpop.f32.mrb[4].mxu1 }
 0x12e   : > { %2434 = vrcp.f32 %v956_v11  ;;  %v2226_v60 = vmul.f32 -1.442695, %v915_v13  ;;  %v919_v15 = vadd.f32 %v867_v29, %v664_v18  ;;  %v869_v28 = vpop.f32.mrb[7].mxu0  ;;  %v667_v33 = vadd.f32 %v3329_v30, %v638_v2  ;;  %v908_v18 = vpop.f32.mrb[5].mxu1 }
 0x12f   : > { %2436 = vtanh.f32 %v966_v20  ;;  %v2228_v26 = vmul.f32 -1.442695, %v916_v39  ;;  %v920_v22 = vadd.f32 %v869_v28, %v665_v40  ;;  %v3342_v34 = vsel %vm3323_vm0, %v966_v20, %v323_v12  ;;  %v910_v4 = vpop.f32.mrb[6].mxu1  ;;  %v2431_v12 = vpop.eup %2430 }
 0x130   : > { %2438 = vpow2.f32 %v2226_v60  ;;  %v2227_v5 = vmul.f32 -1.442695, %v919_v15  ;;  %v662_v11 = vadd.f32 %v3333_v10, %v633_v21  ;;  %v918_v13 = vadd.f32 %v908_v18, %v663_v23  ;;  %v912_v14 = vpop.f32.mrb[7].mxu1 }
 0x131   : > { %2440 = vpow2.f32 %v2228_v26  ;;  %v2229_v17 = vmul.f32 -1.442695, %v920_v22  ;;  %v666_v40 = vadd.f32 %v3333_v10, %v637_v8  ;;  %v922_v27 = vadd.f32 %v912_v14, %v667_v33 }
 0x132   : > { %2442 = vpow2.f32 %v2227_v5  ;;  %v917_v16 = vadd.f32 %v906_v19, %v662_v11  ;;  %v2230_v35 = vmul.f32 -1.442695, %v918_v13  ;;  %v2155_v13 = vld [vmem:[%s4023_s5 + $0x18] sm:$0xff] }
 0x133   : > { %2444 = vpow2.f32 %v2229_v17  ;;  %v921_v6 = vadd.f32 %v910_v4, %v666_v40  ;;  %v2231_v2 = vmul.f32 -1.442695, %v922_v27 }
 0x134   : > { %2446 = vtanh.f32 %v917_v16 }
 0x135   : > { %2448 = vpow2.f32 %v2230_v35  ;;  %v4147_v35 = vld [vmem:[#allocation37_spill] sm:$0xff] }
 0x136   : > { %2450 = vtanh.f32 %v921_v6 }
 0x137   : > { %v2433_v9 = vpop.eup %2432  ;;  %2452 = vpow2.f32 %v2231_v2  ;;  %v4158_v2 = vld [vmem:[#allocation14_spill] sm:$0xff] }
 0x138   : > { %v2435_v20 = vpop.eup %2434  ;;  %v969_v39 = vmul.f32 %v2433_v9, %v2431_v12 }
 0x139   : > { %v2437_v29 = vpop.eup %2436 }
 0x13a   : > { %v2439_v21 = vpop.eup %2438  ;;  %v970_v60 = vmul.f32 %v2437_v29, %v2435_v20  ;;  %v3350_v26 = vsel %vm3323_vm0, %v969_v39, %v2986_v31  ;;  %v4157_v20 = vld [vmem:[#allocation7_spill] sm:$0xff]  ;;  %v4159_v39 = vld [vmem:[#allocation8_spill] sm:$0xff] }
 0x13b   : > { %v2441_v15 = vpop.eup %2440  ;;  %v977_v28 = vadd.f32 1.0, %v2439_v21  ;;  %v4160_v29 = vld [vmem:[#allocation15_spill] sm:$0xff] }
 0x13c   : > { %v2443_v23 = vpop.eup %2442  ;;  %v989_v8 = vadd.f32 1.0, %v2441_v15  ;;  %v3355_v22 = vsel %vm3323_vm0, %v970_v60, %v2992_v32  ;;  %v4161_v21 = vld [vmem:[#allocation11_spill] sm:$0xff]  ;;  %v4162_v60 = vld [vmem:[#allocation18_spill] sm:$0xff]  ;;  %v4163_v15 = vld [vmem:[#allocation12_spill] sm:$0xff] }
 0x13d   : > { %v2445_v5 = vpop.eup %2444  ;;  %2454 = vrcp.f32 %v977_v28  ;;  %v978_v19 = vadd.f32 1.0, %v2443_v23  ;;  %v1053_v33 = vpack.c.bf16 %v3355_v22, %v3350_v26  ;;  %v4164_v28 = vld [vmem:[#allocation19_spill] sm:$0xff]  ;;  %v4165_v23 = vld [vmem:[#allocation16_spill] sm:$0xff] }
 0x13e   : > { %2456 = vrcp.f32 %v989_v8  ;;  %v990_v17 = vadd.f32 1.0, %v2445_v5  ;;  %v2447_v31 = vpop.eup %2446  ;;  %v4166_v8 = vld [vmem:[#allocation22_spill] sm:$0xff]  ;;  %v4167_v5 = vld [vmem:[#allocation17_spill] sm:$0xff] }
 0x13f   : > { %2458 = vrcp.f32 %v978_v19  ;;  %1087 = vmatmul.mubr.bf16.vlgmr.msra.gmra.mrb[8].mxu0 %v1053_v33  ;;  %1130 = vmatmul.mubr.bf16.vlgmr.msra.gmra.mrb[8].mxu1 %v1053_v33  ;;  %v2449_v32 = vpop.eup %2448  ;;  %v4168_v19 = vld [vmem:[#allocation23_spill] sm:$0xff]  ;;  %v4169_v33 = vld [vmem:[#allocation20_spill] sm:$0xff] }
 0x140   : > { %2460 = vrcp.f32 %v990_v17  ;;  %1171 = vmatpush1.bf16.msra.mxu0 %v3017_v37  ;;  %1214 = vmatpush1.bf16.msra.mxu1 %v3055_v43  ;;  %v2451_v11 = vpop.eup %2450  ;;  %v4170_v17 = vld [vmem:[#allocation26_spill] sm:$0xff] }
 0x141   : > { %1172 = vmatprep.subr.bf16.mxu0 %v3023_v38  ;;  %1215 = vmatprep.subr.bf16.mxu1 %v3061_v44  ;;  %v2453_v37 = vpop.eup %2452  ;;  %v2154_v38 = vld [vmem:[%s4023_s5 + $0x10] sm:$0xff]  ;;  %v1003_v44 = vadd.f32 1.0, %v2449_v32 }
 0x142   : > { %1202 = vmatprep.mubr.bf16.mxu0 %v4130_v0  ;;  %1245 = vmatprep.mubr.bf16.mxu1 %v4130_v0  ;;  %v1004_v40 = vadd.f32 1.0, %v2453_v37  ;;  %v4172_v32 = vld [vmem:[#allocation28_spill] sm:$0xff]  ;;  %v4174_v37 = vld [vmem:[#allocation30_spill] sm:$0xff] }
 0x143   : > { %2462 = vrcp.f32 %v1003_v44  ;;  %v4177_v44 = vld [vmem:[#allocation27_spill] sm:$0xff] }
 0x144   : > { %1173 = vmatpush1.bf16.msra.mxu0 %v3042_v41  ;;  %1216 = vmatpush1.bf16.msra.mxu1 %v3079_v47 }
 0x145   : > { %1174 = vmatprep.subr.bf16.mxu0 %v3049_v42  ;;  %1217 = vmatprep.subr.bf16.mxu1 %v3085_v48 }
 0x147   : > { %v2455_v43 = vpop.eup %2454 }
 0x148   : > { %v2457_v18 = vpop.eup %2456  ;;  %v1011_v41 = vmul.f32 %v2455_v43, %v2447_v31  ;;  %1175 = vmatpush1.bf16.msra.mxu0 %v3067_v45  ;;  %1218 = vmatpush1.bf16.msra.mxu1 %v3104_v51  ;;  %v4171_v31 = vld [vmem:[#allocation21_spill] sm:$0xff]  ;;  %v4176_v43 = vld [vmem:[#allocation31_spill] sm:$0xff] }
 0x149   : > { %v2459_v42 = vpop.eup %2458  ;;  %v1009_v47 = vmul.f32 %v2457_v18, %v2154_v38  ;;  %1176 = vmatprep.subr.bf16.mxu0 %v3072_v46  ;;  %1219 = vmatprep.subr.bf16.mxu1 %v3110_v52  ;;  %v4178_v18 = vld [vmem:[#allocation32_spill] sm:$0xff] }
 0x14a   : > { %v2461_v48 = vpop.eup %2460  ;;  %v1012_v4 = vmul.f32 %v2459_v42, %v2451_v11  ;;  %v4173_v11 = vld [vmem:[#allocation24_spill] sm:$0xff]  ;;  %v2232_v42 = vld [vmem:[%s2781_s25 + $0x20] sm:$0xff] }
 0x14b   : > { %v1010_v14 = vmul.f32 %v2461_v48, %v2155_v13  ;;  %v1013_v27 = vadd.f32 %v1011_v41, %v1009_v47  ;;  %v4180_v41 = vld [vmem:[#allocation33_spill] sm:$0xff]  ;;  %v2234_v47 = vld [vmem:[%s2781_s25 + $0x30] sm:$0xff]  ;;  %v1037_v48 = vunpack.c.l.bf16 %v2232_v42 }
 0x14c   : > { %1177 = vmatpush1.bf16.msra.mxu0 %v3092_v49  ;;  %1220 = vmatpush1.bf16.msra.mxu1 %v3128_v55  ;;  %v4143_v49 = vld [vmem:[#allocation36_spill] sm:$0xff]  ;;  %v4145_v55 = vld [vmem:[#allocation35_spill] sm:$0xff] }
 0x14d   : > { %2464 = vtanh.f32 %v1013_v27  ;;  %v1014_v45 = vadd.f32 %v1012_v4, %v1010_v14  ;;  %1178 = vmatprep.subr.bf16.mxu0 %v3098_v50  ;;  %1221 = vmatprep.subr.bf16.mxu1 %v3134_v56  ;;  %v3385_v46 = vsel %vm3323_vm0, %v1013_v27, %v2154_v38  ;;  %v4144_v50 = vld [vmem:[#allocation34_spill] sm:$0xff]  ;;  %v2463_v52 = vpop.eup %2462  ;;  %v4146_v56 = vld [vmem:[#allocation39_spill] sm:$0xff]  ;;  %v4175_v38 = vld [vmem:[#allocation25_spill] sm:$0xff]  ;;  %v1038_v4 = vunpack.c.h.bf16 %v2232_v42 }
 0x14e   : > { %2466 = vrcp.f32 %v1004_v40  ;;  %v1041_v40 = vunpack.c.l.bf16 %v2234_v47  ;;  %v1042_v14 = vunpack.c.h.bf16 %v2234_v47  ;;  %v4181_v27 = vld [vmem:[#allocation40_spill] sm:$0xff]  ;;  %v2236_v47 = vld [vmem:[%s2786_s28 + $0x20] sm:$0xff] }
 0x14f   : > { %2468 = vtanh.f32 %v1014_v45  ;;  %v3389_v51 = vsel %vm3323_vm0, %v1014_v45, %v2155_v13  ;;  %v4179_v13 = vld [vmem:[#allocation29_spill] sm:$0xff]  ;;  %v1045_v45 = vadd.f32 %v1037_v48, %v4181_v27  ;;  %v2238_v48 = vld [vmem:[%s2786_s28 + $0x30] sm:$0xff] }
 0x150   : > { %1179 = vmatpush1.bf16.msra.mxu0 %v3116_v53  ;;  %1222 = vmatpush1.bf16.msra.mxu1 %v3152_v59 }
 0x151   : > { %1180 = vmatprep.subr.bf16.mxu0 %v3122_v54  ;;  %1223 = vmatprep.subr.bf16.mxu1 %v4143_v49  ;;  %v4148_v54 = vld [vmem:[#allocation38_spill] sm:$0xff]  ;;  %v2233_v49 = vld [vmem:[%s2781_s25 + $0x28] sm:$0xff] }
 0x154   : > { %1181 = vmatpush1.bf16.msra.mxu0 %v4144_v50  ;;  %1224 = vmatpush1.bf16.msra.mxu1 %v3176_v63  ;;  %v4182_v50 = vld [vmem:[#allocation41_spill] sm:$0xff] }
 0x155   : > { %1182 = vmatprep.subr.bf16.mxu0 %v4145_v55  ;;  %1225 = vmatprep.subr.bf16.mxu1 %v4146_v56  ;;  %v2235_v55 = vld [vmem:[%s2781_s25 + $0x38] sm:$0xff]  ;;  %v1049_v56 = vadd.f32 %v1041_v40, %v4181_v27  ;;  %v1153_v40 = vunpack.c.l.bf16 %v2236_v47 }
 0x157   : > { %v2465_v12 = vpop.eup %2464 }
 0x158   : > { %v2467_v16 = vpop.eup %2466  ;;  %1183 = vmatpush1.bf16.msra.mxu0 %v4147_v35  ;;  %1226 = vmatpush1.bf16.msra.mxu1 %v3205_v61  ;;  %v1017_v53 = vmul.f32 %v2465_v12, %v2463_v52  ;;  %v1046_v52 = vadd.f32 %v1038_v4, %v4182_v50  ;;  %v1040_v35 = vunpack.c.h.bf16 %v2233_v49 }
 0x159   : > { %v2469_v59 = vpop.eup %2468  ;;  %1184 = vmatprep.subr.bf16.mxu0 %v4148_v54  ;;  %1227 = vmatprep.subr.bf16.mxu1 %v3211_v57  ;;  %v4149_v57 = vld [vmem:[#allocation2_spill] sm:$0xff] }
 0x15a   : > { %v1018_v9 = vmul.f32 %v2469_v59, %v2467_v16  ;;  %v3408_v63 = vsel %vm3323_vm0, %v1017_v53, %v3193_v3  ;;  %v4151_v3 = vld [vmem:[#allocation3_spill] sm:$0xff]  ;;  %v1050_v53 = vadd.f32 %v1042_v14, %v4182_v50 }
 0x15c   : > { %1185 = vmatpush1.bf16.msra.mxu0 %v3188_v36  ;;  %1228 = vmatpush1.bf16.msra.mxu1 %v3220_v62  ;;  %v3413_v61 = vsel %vm3323_vm0, %v1018_v9, %v3198_v58  ;;  %v4150_v62 = vld [vmem:[#allocation6_spill] sm:$0xff]  ;;  %v4152_v36 = vld [vmem:[#allocation9_spill] sm:$0xff]  ;;  %v4153_v58 = vld [vmem:[#allocation4_spill] sm:$0xff] }
 0x15d   : > { %v1169_v6 = vpack.c.bf16 %v3413_v61, %v3408_v63  ;;  %1395 = vmatprep.subr.bf16.mxu0 %v2815_v1  ;;  %1438 = vmatprep.subr.bf16.mxu1 %v2845_v7  ;;  %v4155_v1 = vld [vmem:[#allocation5_spill] sm:$0xff] }
 0x15e   : > { %v4156_v7 = vld [vmem:[#allocation13_spill] sm:$0xff] }
 0x15f   : > { %1203 = vmatmul.mubr.bf16.vlgmr.msra.gmra.mrb[12].mxu0 %v1169_v6  ;;  %1246 = vmatmul.mubr.bf16.vlgmr.msra.gmra.mrb[12].mxu1 %v1169_v6  ;;  %v1044_v6 = vunpack.c.h.bf16 %v2235_v55 }
 0x160   : > { %1396 = vmatpush1.bf16.msra.mxu0 %v4149_v57  ;;  %1439 = vmatpush1.bf16.msra.mxu1 %v4150_v62 }
 0x161   : > { %1397 = vmatprep.subr.bf16.mxu0 %v4151_v3  ;;  %1440 = vmatprep.subr.bf16.mxu1 %v4152_v36 }
 0x162   : > { %1427 = vmatprep.mubr.bf16.mxu0 %v4130_v0  ;;  %1470 = vmatprep.mubr.bf16.mxu1 %v4130_v0 }
 0x164   : > { %1398 = vmatpush1.bf16.msra.mxu0 %v4153_v58  ;;  %1441 = vmatpush1.bf16.msra.mxu1 %v4154_v25  ;;  %v1039_v58 = vunpack.c.l.bf16 %v2233_v49 }
 0x165   : > { %1399 = vmatprep.subr.bf16.mxu0 %v4155_v1  ;;  %1442 = vmatprep.subr.bf16.mxu1 %v4156_v7 }
 0x168   : > { %1400 = vmatpush1.bf16.msra.mxu0 %v4157_v20  ;;  %1443 = vmatpush1.bf16.msra.mxu1 %v4158_v2  ;;  %v4183_v2 = vld [vmem:[#allocation42_spill] sm:$0xff] }
 0x169   : > { %1401 = vmatprep.subr.bf16.mxu0 %v4159_v39  ;;  %1444 = vmatprep.subr.bf16.mxu1 %v4160_v29  ;;  %v1048_v39 = vadd.f32 %v1040_v35, %v4183_v2 }
 0x16c   : > { %1402 = vmatpush1.bf16.msra.mxu0 %v4161_v21  ;;  %1445 = vmatpush1.bf16.msra.mxu1 %v4162_v60  ;;  %v1052_v60 = vadd.f32 %v1044_v6, %v4183_v2 }
 0x16d   : > { %1403 = vmatprep.subr.bf16.mxu0 %v4163_v15  ;;  %1446 = vmatprep.subr.bf16.mxu1 %v4164_v28  ;;  %v4184_v28 = vld [vmem:[#allocation43_spill] sm:$0xff] }
 0x170   : > { %1404 = vmatpush1.bf16.msra.mxu0 %v4165_v23  ;;  %1447 = vmatpush1.bf16.msra.mxu1 %v4166_v8  ;;  %v1047_v23 = vadd.f32 %v1039_v58, %v4184_v28 }
 0x171   : > { %1405 = vmatprep.subr.bf16.mxu0 %v4167_v5  ;;  %1448 = vmatprep.subr.bf16.mxu1 %v4168_v19  ;;  %v1043_v5 = vunpack.c.l.bf16 %v2235_v55 }
 0x174   : > { %1406 = vmatpush1.bf16.msra.mxu0 %v4169_v33  ;;  %1449 = vmatpush1.bf16.msra.mxu1 %v4170_v17 }
 0x175   : > { %1407 = vmatprep.subr.bf16.mxu0 %v4171_v31  ;;  %1450 = vmatprep.subr.bf16.mxu1 %v4172_v32  ;;  %v1051_v31 = vadd.f32 %v1043_v5, %v4184_v28 }
 0x178   : > { %1408 = vmatpush1.bf16.msra.mxu0 %v4173_v11  ;;  %1451 = vmatpush1.bf16.msra.mxu1 %v4174_v37 }
 0x179   : > { %1409 = vmatprep.subr.bf16.mxu0 %v4175_v38  ;;  %1452 = vmatprep.subr.bf16.mxu1 %v4176_v43 }
 0x17c   : > { %1410 = vmatpush1.bf16.msra.mxu0 %v4177_v44  ;;  %1453 = vmatpush1.bf16.msra.mxu1 %v4178_v18 }
 0x17d   : > { %1511 = vmatprep.subr.bf16.mxu0 %v4179_v13  ;;  %1554 = vmatprep.subr.bf16.mxu1 %v4180_v41 }
 0x212   : > { %v1088_v12 = vpop.f32.mrb[8].mxu0  ;;  %v1131_v16 = vpop.f32.mrb[8].mxu1 }
 0x213   : > { %v1140_v59 = vadd.f32 %v1088_v12, %v1045_v45  ;;  %v1090_v54 = vpop.f32.mrb[9].mxu0  ;;  %v1133_v9 = vpop.f32.mrb[9].mxu1  ;;  %v1142_v33 = vadd.f32 %v1131_v16, %v1047_v23  ;;  %v1154_v45 = vunpack.c.h.bf16 %v2236_v47  ;;  %v1158_v12 = vunpack.c.h.bf16 %v2238_v48 }
 0x214   : > { %v1141_v57 = vadd.f32 %v1090_v54, %v1046_v52  ;;  %v1092_v62 = vpop.f32.mrb[10].mxu0  ;;  %v1135_v3 = vpop.f32.mrb[10].mxu1  ;;  %v1143_v8 = vadd.f32 %v1133_v9, %v1048_v39  ;;  %v1157_v52 = vunpack.c.l.bf16 %v2238_v48 }
 0x215   : > { %v2240_v36 = vmul.f32 -1.442695, %v1140_v59  ;;  %v1144_v25 = vadd.f32 %v1092_v62, %v1049_v56  ;;  %v1094_v1 = vpop.f32.mrb[11].mxu0  ;;  %v1137_v7 = vpop.f32.mrb[11].mxu1  ;;  %v1146_v43 = vadd.f32 %v1135_v3, %v1051_v31  ;;  %v2237_v56 = vld [vmem:[%s2786_s28 + $0x28] sm:$0xff]  ;;  %v4186_v59 = vld [vmem:[#allocation44_spill] sm:$0xff] }
 0x216   : > { %v2242_v20 = vmul.f32 -1.442695, %v1141_v57  ;;  %v1145_v29 = vadd.f32 %v1094_v1, %v1050_v53  ;;  %v1147_v19 = vadd.f32 %v1137_v7, %v1052_v60  ;;  %v2244_v17 = vmul.f32 -1.442695, %v1143_v8  ;;  %v4187_v57 = vld [vmem:[#allocation45_spill] sm:$0xff] }
 0x217   : > { %2470 = vpow2.f32 %v2240_v36  ;;  %v2241_v21 = vmul.f32 -1.442695, %v1144_v25  ;;  %v1161_v54 = vadd.f32 %v1153_v40, %v4186_v59  ;;  %v1162_v62 = vadd.f32 %v1154_v45, %v4187_v57 }
 0x218   : > { %2472 = vpow2.f32 %v2242_v20  ;;  %v2243_v15 = vmul.f32 -1.442695, %v1145_v29  ;;  %v2245_v32 = vmul.f32 -1.442695, %v1147_v19  ;;  %v1156_v36 = vunpack.c.h.bf16 %v2237_v56 }
 0x219   : > { %2474 = vpow2.f32 %v2241_v21  ;;  %v1165_v58 = vadd.f32 %v1157_v52, %v4186_v59  ;;  %v3479_v25 = vstv %s1360_s27  ;;  %v1166_v21 = vadd.f32 %v1158_v12, %v4187_v57 }
 0x21a   : > { %2476 = vpow2.f32 %v2243_v15  ;;  %vm1362_vm1 = vcmp.eq.s32.totalorder %v3479_v25, 1  ;;  %v2696_v25 = vld [vmem:[%s4020_s2 + $0x24] ss:$16 sps:$4 sm:$0xff]  }
 0x21b   : > { %2478 = vtanh.f32 %v1142_v33 }
 0x21c   : > { %2480 = vpow2.f32 %v2244_v17  ;;  %v2239_v17 = vld [vmem:[%s2786_s28 + $0x38] sm:$0xff] }
 0x21d   : > { %2482 = vpow2.f32 %v2245_v32  ;;  %v1160_v47 = vunpack.c.h.bf16 %v2239_v17  ;;  %v1159_v40 = vunpack.c.l.bf16 %v2239_v17  ;;  %v3546_v17 = vld [vmem:[%s4020_s2 + $0x128] ss:$16 sps:$4 sm:$0xff]  }
 0x21f   : > { %v1168_v52 = vadd.f32 %v1160_v47, %v3329_v30 }
 0x221   : > { %v2471_v11 = vpop.eup %2470 }
 0x222   : > { %v2473_v37 = vpop.eup %2472  ;;  %v1270_v38 = vadd.f32 1.0, %v2471_v11  ;;  %v1155_v11 = vunpack.c.l.bf16 %v2237_v56  ;;  %v1167_v56 = vadd.f32 %v1159_v40, %v3333_v10  ;;  %v3577_v40 = vld [vmem:[%s4020_s2 + $0x164] ss:$16 sps:$4 sm:$0xff]  }
 0x223   : > { %v1282_v44 = vadd.f32 1.0, %v2473_v37  ;;  %v2475_v18 = vpop.eup %2474  ;;  %v1164_v37 = vadd.f32 %v1156_v36, %v3329_v30 }
 0x224   : > { %2484 = vrcp.f32 %v1270_v38  ;;  %v1271_v13 = vadd.f32 1.0, %v2475_v18  ;;  %v2477_v41 = vpop.eup %2476  ;;  %v1163_v45 = vadd.f32 %v1155_v11, %v3333_v10  ;;  %v3558_v11 = vld [vmem:[%s4020_s2 + $0x14c] ss:$16 sps:$4 sm:$0xff]  }
 0x225   : > { %2486 = vrcp.f32 %v1282_v44  ;;  %v1283_v42 = vadd.f32 1.0, %v2477_v41  ;;  %v2479_v4 = vpop.eup %2478 }
 0x226   : > { %2488 = vtanh.f32 %v1146_v43  ;;  %v2481_v14 = vpop.eup %2480 }
 0x227   : > { %2490 = vrcp.f32 %v1271_v13  ;;  %v2483_v49 = vpop.eup %2482  ;;  %v1296_v53 = vadd.f32 1.0, %v2481_v14 }
 0x228   : > { %2492 = vrcp.f32 %v1283_v42  ;;  %v1297_v20 = vadd.f32 1.0, %v2483_v49 }
 0x229   : > { %2494 = vrcp.f32 %v1296_v53 }
 0x22e   : > { %v2485_v55 = vpop.eup %2484 }
 0x22f   : > { %v2487_v16 = vpop.eup %2486  ;;  %v1304_v35 = vmul.f32 %v2485_v55, %v2479_v4 }
 0x230   : > { %v2489_v9 = vpop.eup %2488  ;;  %v1302_v6 = vmul.f32 %v2487_v16, %v3337_v24 }
 0x231   : > { %v2491_v3 = vpop.eup %2490 }
 0x232   : > { %v1306_v1 = vadd.f32 %v1304_v35, %v1302_v6  ;;  %v1305_v7 = vmul.f32 %v2491_v3, %v2489_v9  ;;  %v1204_v39 = vpop.f32.mrb[12].mxu0  ;;  %v1247_v29 = vpop.f32.mrb[12].mxu1 }
 0x233   : > { %v2493_v60 = vpop.eup %2492  ;;  %v1256_v15 = vadd.f32 %v1204_v39, %v1161_v54  ;;  %v1206_v23 = vpop.f32.mrb[13].mxu0  ;;  %v1258_v12 = vadd.f32 %v1247_v29, %v1163_v45 }
 0x234   : > { %v1249_v8 = vpop.f32.mrb[13].mxu1  ;;  %2496 = vtanh.f32 %v1306_v1  ;;  %v1303_v5 = vmul.f32 %v2493_v60, %v3342_v34  ;;  %v1257_v19 = vadd.f32 %v1206_v23, %v1162_v62  ;;  %v1208_v33 = vpop.f32.mrb[14].mxu0  ;;  %v3489_v48 = vsel %vm1362_vm1, %v1306_v1, %v3337_v24  ;;  %v3526_v23 = vld [vmem:[%s4020_s2 + $0x124] ss:$16 sps:$4 sm:$0xff]  }
 0x235   : > { %v1251_v31 = vpop.f32.mrb[14].mxu1  ;;  %v2246_v32 = vmul.f32 -1.442695, %v1256_v15  ;;  %v1260_v38 = vadd.f32 %v1208_v33, %v1165_v58  ;;  %v1210_v43 = vpop.f32.mrb[15].mxu0  ;;  %2498 = vrcp.f32 %v1297_v20  ;;  %v1259_v49 = vadd.f32 %v1249_v8, %v1164_v37  ;;  %v3532_v8 = vld [vmem:[%s4020_s2 + $0x12c] ss:$16 sps:$4 sm:$0xff]  }
 0x236   : > { %v1253_v44 = vpop.f32.mrb[15].mxu1  ;;  %v1307_v18 = vadd.f32 %v1305_v7, %v1303_v5  ;;  %v2248_v13 = vmul.f32 -1.442695, %v1257_v19  ;;  %v1261_v41 = vadd.f32 %v1210_v43, %v1166_v21  ;;  %v2495_v55 = vpop.eup %2494  ;;  %v1262_v9 = vadd.f32 %v1251_v31, %v1167_v56  ;;  %v3540_v33 = vld [vmem:[%s4020_s2 + $0x120] ss:$16 sps:$4 sm:$0xff]  }
 0x237   : > { %2500 = vpow2.f32 %v2246_v32  ;;  %v2247_v42 = vmul.f32 -1.442695, %v1260_v38  ;;  %v2250_v16 = vmul.f32 -1.442695, %v1259_v49  ;;  %v1263_v35 = vadd.f32 %v1253_v44, %v1168_v52  ;;  %v3552_v32 = vld [vmem:[%s4020_s2 + $0x144] ss:$16 sps:$4 sm:$0xff]  }
 0x238   : > { %2502 = vtanh.f32 %v1307_v18  ;;  %v3494_v4 = vsel %vm1362_vm1, %v1307_v18, %v3342_v34  ;;  %v2249_v14 = vmul.f32 -1.442695, %v1261_v41  ;;  %v3565_v41 = vld [vmem:[%s4020_s2 + $0x140] ss:$16 sps:$4 sm:$0xff]  }
 0x239   : > { %2504 = vpow2.f32 %v2248_v13  ;;  %v2251_v36 = vmul.f32 -1.442695, %v1263_v35  ;;  %v3607_v35 = vld [vmem:[%s4020_s2 + $0x184] ss:$16 sps:$4 sm:$0xff]  }
 0x23a   : > { %2506 = vpow2.f32 %v2247_v42  ;;  %v3571_v42 = vld [vmem:[%s4020_s2 + $0x148] ss:$16 sps:$4 sm:$0xff]  }
 0x23b   : > { %2508 = vpow2.f32 %v2249_v14  ;;  %v3583_v14 = vld [vmem:[%s4020_s2 + $0x16c] ss:$16 sps:$4 sm:$0xff]  }
 0x23c   : > { %2510 = vtanh.f32 %v1258_v12  ;;  %v3596_v12 = vld [vmem:[%s4020_s2 + $0x168] ss:$16 sps:$4 sm:$0xff]  }
 0x23d   : > { %2512 = vpow2.f32 %v2250_v16 }
 0x23e   : > { %v2497_v24 = vpop.eup %2496 }
 0x23f   : > { %v1310_v53 = vmul.f32 %v2497_v24, %v2495_v55  ;;  %v2499_v34 = vpop.eup %2498  ;;  %v3590_v24 = vld [vmem:[%s4020_s2 + $0x160] ss:$16 sps:$4 sm:$0xff]  }
 0x241   : > { %v2501_v54 = vpop.eup %2500  ;;  %v3502_v20 = vsel %vm1362_vm1, %v1310_v53, %v3350_v26  ;;  %v3514_v26 = vld [vmem:[%s4020_s2 + $0x100] ss:$16 sps:$4 sm:$0xff]   ;;  %v3613_v53 = vld [vmem:[%s4020_s2 + $0x18c] ss:$16 sps:$4 sm:$0xff]  }
 0x242   : > { %v2503_v6 = vpop.eup %2502  ;;  %v1318_v62 = vadd.f32 1.0, %v2501_v54  ;;  %v3625_v54 = vld [vmem:[%s4020_s2 + $0x188] ss:$16 sps:$4 sm:$0xff]  }
 0x243   : > { %v2505_v3 = vpop.eup %2504  ;;  %v1311_v58 = vmul.f32 %v2503_v6, %v2499_v34  ;;  %v3636_v6 = vld [vmem:[%s4020_s2 + $0x1a4] ss:$16 sps:$4 sm:$0xff]  }
 0x244   : > { %2514 = vrcp.f32 %v1318_v62  ;;  %v1330_v1 = vadd.f32 1.0, %v2505_v3  ;;  %v2507_v7 = vpop.eup %2506  ;;  %v3642_v62 = vld [vmem:[%s4020_s2 + $0x1ac] ss:$16 sps:$4 sm:$0xff]   ;;  %v3648_v3 = vld [vmem:[%s4020_s2 + $0x1a0] ss:$16 sps:$4 sm:$0xff]  }
 0x245   : > { %2516 = vtanh.f32 %v1262_v9  ;;  %v3507_v39 = vsel %vm1362_vm1, %v1311_v58, %v3355_v22  ;;  %v1319_v29 = vadd.f32 1.0, %v2507_v7  ;;  %v2509_v60 = vpop.eup %2508  ;;  %v3520_v22 = vld [vmem:[%s4020_s2 + $0x108] ss:$16 sps:$4 sm:$0xff]   ;;  %v3660_v58 = vld [vmem:[%s4020_s2 + $0x1c4] ss:$16 sps:$4 sm:$0xff]  }
 0x246   : > { %2518 = vrcp.f32 %v1330_v1  ;;  %v1394_v21 = vpack.c.bf16 %v3507_v39, %v3502_v20  ;;  %v1331_v15 = vadd.f32 1.0, %v2509_v60  ;;  %v2511_v5 = vpop.eup %2510  ;;  %v3666_v1 = vld [vmem:[%s4020_s2 + $0x1cc] ss:$16 sps:$4 sm:$0xff]   ;;  %v3678_v60 = vld [vmem:[%s4020_s2 + $0x1c8] ss:$16 sps:$4 sm:$0xff]  }
 0x247   : > { %2520 = vpow2.f32 %v2251_v36  ;;  %v2513_v19 = vpop.eup %2512  ;;  %4189 = vst [vmem:[#allocation34_spill] sm:$0xff] %v3678_v60 }
 0x248   : > { %2522 = vrcp.f32 %v1319_v29  ;;  %1428 = vmatmul.mubr.bf16.vlgmr.msra.gmra.mrb[16].mxu0 %v1394_v21  ;;  %1471 = vmatmul.mubr.bf16.vlgmr.msra.gmra.mrb[16].mxu1 %v1394_v21  ;;  %v1344_v44 = vadd.f32 1.0, %v2513_v19  ;;  %v3672_v21 = vld [vmem:[%s4020_s2 + $0x1c0] ss:$16 sps:$4 sm:$0xff]   ;;  %v3690_v19 = vld [vmem:[%s4020_s2 + $0x1ec] ss:$16 sps:$4 sm:$0xff]  }
 0x249   : > { %1512 = vmatpush1.bf16.msra.mxu0 %v3514_v26  ;;  %1555 = vmatpush1.bf16.msra.mxu1 %v3520_v22  ;;  %2524 = vrcp.f32 %v1331_v15  ;;  %4188 = vst [vmem:[#allocation36_spill] sm:$0xff] %v3672_v21  ;;  %4191 = vst [vmem:[#allocation39_spill] sm:$0xff] %v3690_v19 }
 0x24a   : > { %1513 = vmatprep.subr.bf16.mxu0 %v3526_v23  ;;  %1556 = vmatprep.subr.bf16.mxu1 %v3532_v8  ;;  %2526 = vrcp.f32 %v1344_v44 }
 0x24b   : > { %1543 = vmatprep.mubr.bf16.mxu0 %v4130_v0  ;;  %1586 = vmatprep.mubr.bf16.mxu1 %v4130_v0 }
 0x24d   : > { %1514 = vmatpush1.bf16.msra.mxu0 %v3540_v33  ;;  %1557 = vmatpush1.bf16.msra.mxu1 %v3546_v17 }
 0x24e   : > { %v2515_v31 = vpop.eup %2514  ;;  %1515 = vmatprep.subr.bf16.mxu0 %v3552_v32  ;;  %1558 = vmatprep.subr.bf16.mxu1 %v3558_v11 }
 0x24f   : > { %v2517_v37 = vpop.eup %2516  ;;  %v1352_v38 = vmul.f32 %v2515_v31, %v2511_v5  ;;  %v3684_v5 = vld [vmem:[%s4020_s2 + $0x1e4] ss:$16 sps:$4 sm:$0xff]  }
 0x250   : > { %v2519_v43 = vpop.eup %2518  ;;  %4190 = vst [vmem:[#allocation35_spill] sm:$0xff] %v3684_v5 }
 0x251   : > { %v2521_v18 = vpop.eup %2520  ;;  %v1350_v13 = vmul.f32 %v2519_v43, %v3385_v46  ;;  %1516 = vmatpush1.bf16.msra.mxu0 %v3565_v41  ;;  %1559 = vmatpush1.bf16.msra.mxu1 %v3571_v42  ;;  %v3702_v43 = vld [vmem:[%s4020_s2 + $0x1e8] ss:$16 sps:$4 sm:$0xff]  }
 0x252   : > { %v2523_v47 = vpop.eup %2522  ;;  %1517 = vmatprep.subr.bf16.mxu0 %v3577_v40  ;;  %1560 = vmatprep.subr.bf16.mxu1 %v3583_v14  ;;  %v1345_v55 = vadd.f32 1.0, %v2521_v18  ;;  %4193 = vst [vmem:[#allocation38_spill] sm:$0xff] %v3702_v43 }
 0x253   : > { %v1354_v45 = vadd.f32 %v1352_v38, %v1350_v13  ;;  %v1353_v49 = vmul.f32 %v2523_v47, %v2517_v37  ;;  %v2525_v52 = vpop.eup %2524  ;;  %v3696_v38 = vld [vmem:[%s4020_s2 + $0x1e0] ss:$16 sps:$4 sm:$0xff]   ;;  %v2692_v13 = vld [vmem:[%s4020_s2 + $0x4] ss:$16 sps:$4 sm:$0xff]   ;;  %v2693_v47 = vld [vmem:[%s4020_s2 + $0xc] ss:$16 sps:$4 sm:$0xff]  }
 0x254   : > { %v1351_v56 = vmul.f32 %v2525_v52, %v3389_v51  ;;  %v2527_v36 = vpop.eup %2526  ;;  %4192 = vst [vmem:[#allocation37_spill] sm:$0xff] %v3696_v38  ;;  %v2698_v52 = vld [vmem:[%s4020_s2 + $0x20] ss:$16 sps:$4 sm:$0xff]  }
 0x255   : > { %2528 = vtanh.f32 %v1354_v45  ;;  %1518 = vmatpush1.bf16.msra.mxu0 %v3590_v24  ;;  %1561 = vmatpush1.bf16.msra.mxu1 %v3596_v12  ;;  %v3602_v16 = vsel %vm1362_vm1, %v1354_v45, %v3385_v46  ;;  %v3619_v46 = vld [vmem:[%s4020_s2 + $0x180] ss:$16 sps:$4 sm:$0xff]  }
 0x256   : > { %1519 = vmatprep.subr.bf16.mxu0 %v3607_v35  ;;  %1562 = vmatprep.subr.bf16.mxu1 %v3613_v53  ;;  %v1355_v34 = vadd.f32 %v1353_v49, %v1351_v56  ;;  %2530 = vrcp.f32 %v1345_v55  ;;  %v2697_v49 = vld [vmem:[%s4020_s2 + $0x2c] ss:$16 sps:$4 sm:$0xff]   ;;  %v2699_v55 = vld [vmem:[%s4020_s2 + $0x28] ss:$16 sps:$4 sm:$0xff]   ;;  %v2700_v56 = vld [vmem:[%s4020_s2 + $0x44] ss:$16 sps:$4 sm:$0xff]  }
 0x258   : > { %2532 = vtanh.f32 %v1355_v34  ;;  %v3631_v9 = vsel %vm1362_vm1, %v1355_v34, %v3389_v51  ;;  %v3654_v51 = vld [vmem:[%s4020_s2 + $0x1a8] ss:$16 sps:$4 sm:$0xff]   ;;  %v2701_v34 = vld [vmem:[%s4020_s2 + $0x4c] ss:$16 sps:$4 sm:$0xff]  }
 0x259   : > { %1520 = vmatpush1.bf16.msra.mxu0 %v3619_v46  ;;  %1563 = vmatpush1.bf16.msra.mxu1 %v3625_v54 }
 0x25a   : > { %1521 = vmatprep.subr.bf16.mxu0 %v3636_v6  ;;  %1564 = vmatprep.subr.bf16.mxu1 %v3642_v62 }
 0x25d   : > { %1522 = vmatpush1.bf16.msra.mxu0 %v3648_v3  ;;  %1565 = vmatpush1.bf16.msra.mxu1 %v3654_v51 }
 0x25e   : > { %1523 = vmatprep.subr.bf16.mxu0 %v3660_v58  ;;  %1566 = vmatprep.subr.bf16.mxu1 %v3666_v1 }
 0x25f   : > { %v2529_v7 = vpop.eup %2528 }
 0x260   : > { %v1358_v29 = vmul.f32 %v2529_v7, %v2527_v36  ;;  %v2531_v15 = vpop.eup %2530  ;;  %v2702_v36 = vld [vmem:[%s4020_s2 + $0x40] ss:$16 sps:$4 sm:$0xff]   ;;  %v2703_v7 = vld [vmem:[%s4020_s2 + $0x48] ss:$16 sps:$4 sm:$0xff]  }
 0x261   : > { %1524 = vmatpush1.bf16.msra.mxu0 %v3672_v21  ;;  %1567 = vmatpush1.bf16.msra.mxu1 %v3678_v60 }
 0x262   : > { %1525 = vmatprep.subr.bf16.mxu0 %v3684_v5  ;;  %1568 = vmatprep.subr.bf16.mxu1 %v3690_v19  ;;  %v2533_v31 = vpop.eup %2532  ;;  %v3708_v44 = vsel %vm1362_vm1, %v1358_v29, %v3408_v63  ;;  %v2694_v63 = vld [vmem:[%s4020_s2] ss:$16 sps:$4 sm:$0xff]   ;;  %v2704_v29 = vld [vmem:[%s4020_s2 + $0x64] ss:$16 sps:$4 sm:$0xff]  }
 0x263   : > { %v1359_v37 = vmul.f32 %v2533_v31, %v2531_v15  ;;  %4194 = vst [vmem:[#allocation2_spill] sm:$0xff] %v3708_v44  ;;  %v2705_v15 = vld [vmem:[%s4020_s2 + $0x6c] ss:$16 sps:$4 sm:$0xff]   ;;  %v2706_v31 = vld [vmem:[%s4020_s2 + $0x60] ss:$16 sps:$4 sm:$0xff]  }
 0x265   : > { %1526 = vmatpush1.bf16.msra.mxu0 %v3696_v38  ;;  %1569 = vmatpush1.bf16.msra.mxu1 %v3702_v43  ;;  %v3713_v18 = vsel %vm1362_vm1, %v1359_v37, %v3413_v61  ;;  %v2695_v61 = vld [vmem:[%s4020_s2 + $0x8] ss:$16 sps:$4 sm:$0xff]  }
 0x266   : > { %4195 = vst [vmem:[#allocation6_spill] sm:$0xff] %v3713_v18  ;;  %1736 = vmatprep.subr.bf16.mxu0 %v2692_v13  ;;  %1779 = vmatprep.subr.bf16.mxu1 %v2693_v47  ;;  %v1510_v45 = vpack.c.bf16 %v3713_v18, %v3708_v44  ;;  %v2707_v37 = vld [vmem:[%s4020_s2 + $0x68] ss:$16 sps:$4 sm:$0xff]   ;;  %v2708_v13 = vld [vmem:[%s4020_s2 + $0x84] ss:$16 sps:$4 sm:$0xff]  }
 0x267   : > { %v2709_v47 = vld [vmem:[%s4020_s2 + $0x8c] ss:$16 sps:$4 sm:$0xff]  }
 0x268   : > { %1544 = vmatmul.mubr.bf16.vlgmr.msra.gmra.mrb[20].mxu0 %v1510_v45  ;;  %1587 = vmatmul.mubr.bf16.vlgmr.msra.gmra.mrb[20].mxu1 %v1510_v45  ;;  %v2710_v45 = vld [vmem:[%s4020_s2 + $0x80] ss:$16 sps:$4 sm:$0xff]   ;;  %v2255_v18 = vld [vmem:[%s2781_s25 + $0x58] sm:$0xff] }
 0x269   : > { %1737 = vmatpush1.bf16.msra.mxu0 %v2694_v63  ;;  %1780 = vmatpush1.bf16.msra.mxu1 %v2695_v61  ;;  %v2711_v63 = vld [vmem:[%s4020_s2 + $0x88] ss:$16 sps:$4 sm:$0xff]   ;;  %v2712_v61 = vld [vmem:[%s4020_s2 + $0xa4] ss:$16 sps:$4 sm:$0xff]   ;;  %v1385_v60 = vunpack.c.h.bf16 %v2255_v18 }
 0x26a   : > { %1738 = vmatprep.subr.bf16.mxu0 %v2696_v25  ;;  %1781 = vmatprep.subr.bf16.mxu1 %v2697_v49  ;;  %v2713_v25 = vld [vmem:[%s4020_s2 + $0xac] ss:$16 sps:$4 sm:$0xff]   ;;  %v2714_v49 = vld [vmem:[%s4020_s2 + $0xa0] ss:$16 sps:$4 sm:$0xff]  }
 0x26b   : > { %1768 = vmatprep.mubr.bf16.mxu0 %v4130_v0  ;;  %1811 = vmatprep.mubr.bf16.mxu1 %v4130_v0 }
 0x26d   : > { %1739 = vmatpush1.bf16.msra.mxu0 %v2698_v52  ;;  %1782 = vmatpush1.bf16.msra.mxu1 %v2699_v55  ;;  %v2715_v52 = vld [vmem:[%s4020_s2 + $0xa8] ss:$16 sps:$4 sm:$0xff]   ;;  %v2716_v55 = vld [vmem:[%s4020_s2 + $0xc4] ss:$16 sps:$4 sm:$0xff]  }
 0x26e   : > { %1740 = vmatprep.subr.bf16.mxu0 %v2700_v56  ;;  %1783 = vmatprep.subr.bf16.mxu1 %v2701_v34  ;;  %v2717_v56 = vld [vmem:[%s4020_s2 + $0xcc] ss:$16 sps:$4 sm:$0xff]   ;;  %v2718_v34 = vld [vmem:[%s4020_s2 + $0xc0] ss:$16 sps:$4 sm:$0xff]  }
 0x271   : > { %1741 = vmatpush1.bf16.msra.mxu0 %v2702_v36  ;;  %1784 = vmatpush1.bf16.msra.mxu1 %v2703_v7  ;;  %v2719_v36 = vld [vmem:[%s4020_s2 + $0xc8] ss:$16 sps:$4 sm:$0xff]   ;;  %v2720_v7 = vld [vmem:[%s4020_s2 + $0xe4] ss:$16 sps:$4 sm:$0xff]  }
 0x272   : > { %1742 = vmatprep.subr.bf16.mxu0 %v2704_v29  ;;  %1785 = vmatprep.subr.bf16.mxu1 %v2705_v15  ;;  %v2721_v29 = vld [vmem:[%s4020_s2 + $0xec] ss:$16 sps:$4 sm:$0xff]   ;;  %v2722_v15 = vld [vmem:[%s4020_s2 + $0xe0] ss:$16 sps:$4 sm:$0xff]  }
 0x275   : > { %1743 = vmatpush1.bf16.msra.mxu0 %v2706_v31  ;;  %1786 = vmatpush1.bf16.msra.mxu1 %v2707_v37  ;;  %v2723_v31 = vld [vmem:[%s4020_s2 + $0xe8] ss:$16 sps:$4 sm:$0xff]   ;;  %v2724_v37 = vld [vmem:[%s4020_s2 + $0x104] ss:$16 sps:$4 sm:$0xff]  }
 0x276   : > { %1744 = vmatprep.subr.bf16.mxu0 %v2708_v13  ;;  %1787 = vmatprep.subr.bf16.mxu1 %v2709_v47  ;;  %v2725_v13 = vld [vmem:[%s4020_s2 + $0x10c] ss:$16 sps:$4 sm:$0xff]   ;;  %v2252_v47 = vld [vmem:[%s2781_s25 + $0x40] sm:$0xff] }
 0x279   : > { %1745 = vmatpush1.bf16.msra.mxu0 %v2710_v45  ;;  %1788 = vmatpush1.bf16.msra.mxu1 %v2711_v63  ;;  %v2254_v45 = vld [vmem:[%s2781_s25 + $0x50] sm:$0xff]  ;;  %v1378_v63 = vunpack.c.l.bf16 %v2252_v47 }
 0x27a   : > { %1746 = vmatprep.subr.bf16.mxu0 %v2712_v61  ;;  %1789 = vmatprep.subr.bf16.mxu1 %v2713_v25  ;;  %v1379_v61 = vunpack.c.h.bf16 %v2252_v47  ;;  %v1382_v25 = vunpack.c.l.bf16 %v2254_v45 }
 0x27d   : > { %1747 = vmatpush1.bf16.msra.mxu0 %v2714_v49  ;;  %1790 = vmatpush1.bf16.msra.mxu1 %v2715_v52  ;;  %v1383_v49 = vunpack.c.h.bf16 %v2254_v45  ;;  %v1386_v52 = vadd.f32 %v1378_v63, %v4181_v27 }
 0x27e   : > { %1748 = vmatprep.subr.bf16.mxu0 %v2716_v55  ;;  %1791 = vmatprep.subr.bf16.mxu1 %v2717_v56  ;;  %v2253_v55 = vld [vmem:[%s2781_s25 + $0x48] sm:$0xff]  ;;  %v1387_v56 = vadd.f32 %v1379_v61, %v4182_v50 }
 0x27f   : > { %v1380_v38 = vunpack.c.l.bf16 %v2253_v55 }
 0x281   : > { %1749 = vmatpush1.bf16.msra.mxu0 %v2718_v34  ;;  %1792 = vmatpush1.bf16.msra.mxu1 %v2719_v36  ;;  %v1390_v34 = vadd.f32 %v1382_v25, %v4181_v27 }
 0x282   : > { %1750 = vmatprep.subr.bf16.mxu0 %v2720_v7  ;;  %1793 = vmatprep.subr.bf16.mxu1 %v2721_v29  ;;  %v1381_v29 = vunpack.c.h.bf16 %v2253_v55 }
 0x284   : > { %v1389_v25 = vadd.f32 %v1381_v29, %v4183_v2 }
 0x285   : > { %1751 = vmatpush1.bf16.msra.mxu0 %v2722_v15  ;;  %1794 = vmatpush1.bf16.msra.mxu1 %v2723_v31  ;;  %v1391_v15 = vadd.f32 %v1383_v49, %v4182_v50  ;;  %v1384_v49 = vunpack.c.l.bf16 %v2255_v18 }
 0x286   : > { %1852 = vmatprep.subr.bf16.mxu0 %v2724_v37  ;;  %1895 = vmatprep.subr.bf16.mxu1 %v2725_v13 }
 0x287   : > { %v1392_v55 = vadd.f32 %v1384_v49, %v4184_v28 }
 0x31b   : > { %v1429_v36 = vpop.f32.mrb[16].mxu0  ;;  %v1472_v7 = vpop.f32.mrb[16].mxu1 }
 0x31c   : > { %v1481_v31 = vadd.f32 %v1429_v36, %v1386_v52  ;;  %v1431_v37 = vpop.f32.mrb[17].mxu0  ;;  %v1474_v13 = vpop.f32.mrb[17].mxu1  ;;  %v1388_v36 = vadd.f32 %v1380_v38, %v4184_v28 }
 0x31d   : > { %v1482_v44 = vadd.f32 %v1431_v37, %v1387_v56  ;;  %v1433_v47 = vpop.f32.mrb[18].mxu0  ;;  %v1476_v43 = vpop.f32.mrb[18].mxu1  ;;  %v1484_v56 = vadd.f32 %v1474_v13, %v1389_v25 }
 0x31e   : > { %v2260_v45 = vmul.f32 -1.442695, %v1481_v31  ;;  %v1485_v63 = vadd.f32 %v1433_v47, %v1390_v34  ;;  %v1435_v19 = vpop.f32.mrb[19].mxu0  ;;  %v1478_v5 = vpop.f32.mrb[19].mxu1  ;;  %v1393_v31 = vadd.f32 %v1385_v60, %v4183_v2  ;;  %v2258_v47 = vld [vmem:[%s2786_s28 + $0x50] sm:$0xff] }
 0x31f   : > { %v2262_v61 = vmul.f32 -1.442695, %v1482_v44  ;;  %v1486_v27 = vadd.f32 %v1435_v19, %v1391_v15  ;;  %v1483_v44 = vadd.f32 %v1472_v7, %v1388_v36  ;;  %v2264_v34 = vmul.f32 -1.442695, %v1484_v56 }
 0x320   : > { %2534 = vpow2.f32 %v2260_v45  ;;  %v2261_v21 = vmul.f32 -1.442695, %v1485_v63  ;;  %v1488_v29 = vadd.f32 %v1478_v5, %v1393_v31  ;;  %v1487_v19 = vadd.f32 %v1476_v43, %v1392_v55  ;;  %v2256_v43 = vld [vmem:[%s2786_s28 + $0x40] sm:$0xff] }
 0x321   : > { %2536 = vpow2.f32 %v2262_v61  ;;  %v2263_v52 = vmul.f32 -1.442695, %v1486_v27  ;;  %v1494_v63 = vunpack.c.l.bf16 %v2256_v43  ;;  %v1495_v25 = vunpack.c.h.bf16 %v2256_v43 }
 0x322   : > { %2538 = vpow2.f32 %v2261_v21  ;;  %v2265_v27 = vmul.f32 -1.442695, %v1488_v29  ;;  %v1499_v55 = vunpack.c.h.bf16 %v2258_v47 }
 0x323   : > { %2540 = vpow2.f32 %v2263_v52  ;;  %v1498_v52 = vunpack.c.l.bf16 %v2258_v47 }
 0x324   : > { %2542 = vtanh.f32 %v1483_v44  ;;  %v3842_v44 = vstv %s1701_s8  ;;  %v1507_v47 = vadd.f32 %v1499_v55, %v4187_v57 }
 0x325   : > { %2544 = vpow2.f32 %v2264_v34  ;;  %vm1703_vm2 = vcmp.eq.s32.totalorder %v3842_v44, 1 }
 0x326   : > { %2546 = vtanh.f32 %v1487_v19  ;;  %v1502_v19 = vadd.f32 %v1494_v63, %v4186_v59 }
 0x32a   : > { %v2535_v15 = vpop.eup %2534 }
 0x32b   : > { %v2537_v37 = vpop.eup %2536  ;;  %v1611_v18 = vadd.f32 1.0, %v2535_v15  ;;  %v2257_v15 = vld [vmem:[%s2786_s28 + $0x48] sm:$0xff] }
 0x32c   : > { %v1623_v38 = vadd.f32 1.0, %v2537_v37  ;;  %v2539_v21 = vpop.eup %2538 }
 0x32d   : > { %2548 = vrcp.f32 %v1611_v18  ;;  %v1612_v60 = vadd.f32 1.0, %v2539_v21  ;;  %v2541_v13 = vpop.eup %2540  ;;  %v1503_v18 = vadd.f32 %v1495_v25, %v4187_v57  ;;  %v1506_v21 = vadd.f32 %v1498_v52, %v4186_v59  ;;  %v2259_v52 = vld [vmem:[%s2786_s28 + $0x58] sm:$0xff] }
 0x32e   : > { %2550 = vrcp.f32 %v1623_v38  ;;  %v1624_v5 = vadd.f32 1.0, %v2541_v13  ;;  %v2543_v7 = vpop.eup %2542 }
 0x32f   : > { %2552 = vpow2.f32 %v2265_v27  ;;  %v2545_v45 = vpop.eup %2544 }
 0x330   : > { %2554 = vrcp.f32 %v1612_v60  ;;  %v2547_v61 = vpop.eup %2546  ;;  %v1637_v31 = vadd.f32 1.0, %v2545_v45 }
 0x331   : > { %2556 = vrcp.f32 %v1624_v5 }
 0x332   : > { %2558 = vrcp.f32 %v1637_v31 }
 0x337   : > { %v2549_v49 = vpop.eup %2548 }
 0x338   : > { %v2551_v36 = vpop.eup %2550  ;;  %v1645_v56 = vmul.f32 %v2549_v49, %v2543_v7  ;;  %v1497_v7 = vunpack.c.h.bf16 %v2257_v15 }
 0x339   : > { %v2553_v34 = vpop.eup %2552  ;;  %v1643_v29 = vmul.f32 %v2551_v36, %v3489_v48 }
 0x33a   : > { %v2555_v37 = vpop.eup %2554  ;;  %v1638_v13 = vadd.f32 1.0, %v2553_v34 }
 0x33b   : > { %v1647_v27 = vadd.f32 %v1645_v56, %v1643_v29  ;;  %v1646_v38 = vmul.f32 %v2555_v37, %v2547_v61  ;;  %v2557_v60 = vpop.eup %2556  ;;  %v1545_v5 = vpop.f32.mrb[20].mxu0  ;;  %v1496_v37 = vunpack.c.l.bf16 %v2257_v15 }
 0x33c   : > { %v1588_v43 = vpop.f32.mrb[20].mxu1  ;;  %v1644_v45 = vmul.f32 %v2557_v60, %v3494_v4  ;;  %v1597_v63 = vadd.f32 %v1545_v5, %v1502_v19  ;;  %v1547_v25 = vpop.f32.mrb[21].mxu0  ;;  %v1505_v19 = vadd.f32 %v1497_v7, %v3329_v30 }
 0x33d   : > { %2560 = vtanh.f32 %v1647_v27  ;;  %v1590_v49 = vpop.f32.mrb[21].mxu1  ;;  %v1598_v61 = vadd.f32 %v1547_v25, %v1503_v18  ;;  %v1549_v36 = vpop.f32.mrb[22].mxu0  ;;  %v3856_v31 = vsel %vm1703_vm2, %v1647_v27, %v3489_v48  ;;  %v1501_v25 = vunpack.c.h.bf16 %v2259_v52 }
 0x33e   : > { %v1592_v56 = vpop.f32.mrb[22].mxu1  ;;  %v1648_v34 = vadd.f32 %v1646_v38, %v1644_v45  ;;  %v2266_v29 = vmul.f32 -1.442695, %v1597_v63  ;;  %v1601_v59 = vadd.f32 %v1549_v36, %v1506_v21  ;;  %v1551_v55 = vpop.f32.mrb[23].mxu0  ;;  %2562 = vrcp.f32 %v1638_v13 }
 0x33f   : > { %v1594_v57 = vpop.f32.mrb[23].mxu1  ;;  %v2268_v60 = vmul.f32 -1.442695, %v1598_v61  ;;  %v1602_v5 = vadd.f32 %v1551_v55, %v1507_v47  ;;  %v1500_v48 = vunpack.c.l.bf16 %v2259_v52  ;;  %v1504_v27 = vadd.f32 %v1496_v37, %v3333_v10  ;;  %v2559_v13 = vpop.eup %2558 }
 0x340   : > { %2564 = vtanh.f32 %v1648_v34  ;;  %v2267_v18 = vmul.f32 -1.442695, %v1601_v59  ;;  %v3862_v28 = vsel %vm1703_vm2, %v1648_v34, %v3494_v4  ;;  %v1600_v38 = vadd.f32 %v1590_v49, %v1505_v19 }
 0x341   : > { %2566 = vpow2.f32 %v2266_v29  ;;  %v2269_v15 = vmul.f32 -1.442695, %v1602_v5  ;;  %v1509_v21 = vadd.f32 %v1501_v25, %v3329_v30  ;;  %v1508_v7 = vadd.f32 %v1500_v48, %v3333_v10 }
 0x342   : > { %2568 = vpow2.f32 %v2268_v60  ;;  %v1599_v47 = vadd.f32 %v1588_v43, %v1504_v27  ;;  %v2270_v63 = vmul.f32 -1.442695, %v1600_v38  ;;  %v4204_v38 = vld [vmem:[#allocation6_spill] sm:$0xff] }
 0x343   : > { %2570 = vpow2.f32 %v2267_v18  ;;  %v1604_v4 = vadd.f32 %v1594_v57, %v1509_v21  ;;  %v1603_v36 = vadd.f32 %v1592_v56, %v1508_v7  ;;  %v2272_v7 = vld [vmem:[%s2781_s25 + $0x60] sm:$0xff] }
 0x344   : > { %2572 = vpow2.f32 %v2269_v15 }
 0x345   : > { %2574 = vtanh.f32 %v1599_v47  ;;  %v2271_v55 = vmul.f32 -1.442695, %v1604_v4  ;;  %v1719_v47 = vunpack.c.l.bf16 %v2272_v7 }
 0x346   : > { %2576 = vpow2.f32 %v2270_v63 }
 0x347   : > { %v2561_v59 = vpop.eup %2560  ;;  %2578 = vtanh.f32 %v1603_v36 }
 0x348   : > { %v1651_v45 = vmul.f32 %v2561_v59, %v2559_v13  ;;  %v2563_v61 = vpop.eup %2562  ;;  %v2274_v59 = vld [vmem:[%s2781_s25 + $0x70] sm:$0xff] }
 0x349   : > { %v1723_v63 = vunpack.c.l.bf16 %v2274_v59  ;;  %v1724_v4 = vunpack.c.h.bf16 %v2274_v59  ;;  %v2278_v59 = vld [vmem:[%s2786_s28 + $0x70] sm:$0xff] }
 0x34a   : > { %v2565_v52 = vpop.eup %2564  ;;  %v3870_v19 = vsel %vm1703_vm2, %v1651_v45, %v3502_v20  ;;  %v1720_v45 = vunpack.c.h.bf16 %v2272_v7 }
 0x34b   : > { %v2567_v34 = vpop.eup %2566  ;;  %v1652_v29 = vmul.f32 %v2565_v52, %v2563_v61  ;;  %v4205_v61 = vld [vmem:[#allocation40_spill] sm:$0xff]  ;;  %v2273_v52 = vld [vmem:[%s2781_s25 + $0x68] sm:$0xff] }
 0x34c   : > { %v2569_v37 = vpop.eup %2568  ;;  %v1659_v49 = vadd.f32 1.0, %v2567_v34  ;;  %v1727_v36 = vadd.f32 %v1719_v47, %v4205_v61  ;;  %v1728_v34 = vadd.f32 %v1720_v45, %v4182_v50  ;;  %v1731_v44 = vadd.f32 %v1723_v63, %v4205_v61 }
 0x34d   : > { %v1671_v60 = vadd.f32 1.0, %v2569_v37  ;;  %v3875_v57 = vsel %vm1703_vm2, %v1652_v29, %v3507_v39  ;;  %v2571_v43 = vpop.eup %2570 }
 0x34e   : > { %2580 = vrcp.f32 %v1659_v49  ;;  %v1735_v56 = vpack.c.bf16 %v3875_v57, %v3870_v19  ;;  %v1660_v5 = vadd.f32 1.0, %v2571_v43  ;;  %v2573_v18 = vpop.eup %2572  ;;  %v1722_v49 = vunpack.c.h.bf16 %v2273_v52 }
 0x34f   : > { %2582 = vrcp.f32 %v1671_v60  ;;  %v1672_v25 = vadd.f32 1.0, %v2573_v18  ;;  %v2575_v20 = vpop.eup %2574 }
 0x350   : > { %2584 = vpow2.f32 %v2271_v55  ;;  %1769 = vmatmul.mubr.bf16.vlgmr.msra.gmra.mrb[24].mxu0 %v1735_v56  ;;  %1812 = vmatmul.mubr.bf16.vlgmr.msra.gmra.mrb[24].mxu1 %v1735_v56  ;;  %v2577_v39 = vpop.eup %2576  ;;  %v1732_v55 = vadd.f32 %v1724_v4, %v4182_v50 }
 0x351   : > { %2586 = vrcp.f32 %v1660_v5  ;;  %1853 = vmatpush1.bf16.msra.mxu0 %v3514_v26  ;;  %1896 = vmatpush1.bf16.msra.mxu1 %v3520_v22  ;;  %v2579_v26 = vpop.eup %2578  ;;  %v2275_v5 = vld [vmem:[%s2781_s25 + $0x78] sm:$0xff]  ;;  %s1712_s25 = sadd.s32 3, %s2774_s20 }
 0x352   : > { %1854 = vmatprep.subr.bf16.mxu0 %v3526_v23  ;;  %1897 = vmatprep.subr.bf16.mxu1 %v3532_v8  ;;  %2588 = vrcp.f32 %v1672_v25  ;;  %v1685_v8 = vadd.f32 1.0, %v2577_v39  ;;  %v1725_v50 = vunpack.c.l.bf16 %v2275_v5  ;;  %p1713_p8 = scmp.lt.s32.totalorder %s1712_s25, 8 }
 0x353   : > { %1884 = vmatprep.mubr.bf16.mxu0 %v4130_v0  ;;  %1927 = vmatprep.mubr.bf16.mxu1 %v4130_v0 }
 0x354   : > { %2590 = vrcp.f32 %v1685_v8  ;;  %s2042_s9 = scalar_select %p1713_p8, 1, 0 }
 0x355   : > { %1855 = vmatpush1.bf16.msra.mxu0 %v3540_v33  ;;  %1898 = vmatpush1.bf16.msra.mxu1 %v3546_v17 }
 0x356   : > { %1856 = vmatprep.subr.bf16.mxu0 %v3552_v32  ;;  %1899 = vmatprep.subr.bf16.mxu1 %v3558_v11  ;;  %v3950_v4 = vstv %s2042_s9 }
 0x357   : > { %vm2044_vm3 = vcmp.eq.s32.totalorder %v3950_v4, 1 }
 0x358   : > { %v2581_v22 = vpop.eup %2580 }
 0x359   : > { %v2583_v23 = vpop.eup %2582  ;;  %v1693_v48 = vmul.f32 %v2581_v22, %v2575_v20  ;;  %1857 = vmatpush1.bf16.msra.mxu0 %v3565_v41  ;;  %1900 = vmatpush1.bf16.msra.mxu1 %v3571_v42 }
 0x35a   : > { %v2585_v0 = vpop.eup %2584  ;;  %v1691_v15 = vmul.f32 %v2583_v23, %v3602_v16  ;;  %1858 = vmatprep.subr.bf16.mxu0 %v3577_v40  ;;  %1901 = vmatprep.subr.bf16.mxu1 %v3583_v14 }
 0x35b   : > { %v2587_v33 = vpop.eup %2586  ;;  %v1686_v27 = vadd.f32 1.0, %v2585_v0  ;;  %v1730_v0 = vadd.f32 %v1722_v49, %v4183_v2  ;;  %v2277_v49 = vld [vmem:[%s2786_s28 + $0x68] sm:$0xff] }
 0x35c   : > { %v1695_v17 = vadd.f32 %v1693_v48, %v1691_v15  ;;  %v1694_v32 = vmul.f32 %v2587_v33, %v2579_v26  ;;  %v2589_v11 = vpop.eup %2588  ;;  %v1721_v26 = vunpack.c.l.bf16 %v2273_v52  ;;  %v1726_v33 = vunpack.c.h.bf16 %v2275_v5 }
 0x35d   : > { %1859 = vmatpush1.bf16.msra.mxu0 %v3590_v24  ;;  %1902 = vmatpush1.bf16.msra.mxu1 %v3596_v12  ;;  %v1692_v41 = vmul.f32 %v2589_v11, %v3631_v9  ;;  %v4206_v11 = vld [vmem:[#allocation43_spill] sm:$0xff] }
 0x35e   : > { %2592 = vtanh.f32 %v1695_v17  ;;  %1860 = vmatprep.subr.bf16.mxu0 %v3607_v35  ;;  %1903 = vmatprep.subr.bf16.mxu1 %v3613_v53  ;;  %v3902_v42 = vsel %vm1703_vm2, %v1695_v17, %v3602_v16  ;;  %v2591_v24 = vpop.eup %2590  ;;  %v4197_v16 = vld [vmem:[#allocation36_spill] sm:$0xff]  ;;  %v4198_v35 = vld [vmem:[#allocation34_spill] sm:$0xff] }
 0x35f   : > { %v1696_v40 = vadd.f32 %v1694_v32, %v1692_v41  ;;  %2594 = vrcp.f32 %v1686_v27  ;;  %v1729_v27 = vadd.f32 %v1721_v26, %v4206_v11 }
 0x361   : > { %1861 = vmatpush1.bf16.msra.mxu0 %v3619_v46  ;;  %1904 = vmatpush1.bf16.msra.mxu1 %v3625_v54  ;;  %2596 = vtanh.f32 %v1696_v40  ;;  %v3911_v14 = vsel %vm1703_vm2, %v1696_v40, %v3631_v9  ;;  %v4199_v46 = vld [vmem:[#allocation35_spill] sm:$0xff]  ;;  %v1734_v40 = vadd.f32 %v1726_v33, %v4183_v2 }
 0x362   : > { %1862 = vmatprep.subr.bf16.mxu0 %v3636_v6  ;;  %1905 = vmatprep.subr.bf16.mxu1 %v3642_v62  ;;  %v4200_v54 = vld [vmem:[#allocation39_spill] sm:$0xff]  ;;  %v4201_v62 = vld [vmem:[#allocation37_spill] sm:$0xff] }
 0x365   : > { %1863 = vmatpush1.bf16.msra.mxu0 %v3648_v3  ;;  %1906 = vmatpush1.bf16.msra.mxu1 %v3654_v51  ;;  %v4202_v3 = vld [vmem:[#allocation38_spill] sm:$0xff] }
 0x366   : > { %1864 = vmatprep.subr.bf16.mxu0 %v3660_v58  ;;  %1907 = vmatprep.subr.bf16.mxu1 %v3666_v1  ;;  %v4203_v58 = vld [vmem:[#allocation2_spill] sm:$0xff] }
 0x368   : > { %v2593_v12 = vpop.eup %2592 }
 0x369   : > { %1865 = vmatpush1.bf16.msra.mxu0 %v4197_v16  ;;  %1908 = vmatpush1.bf16.msra.mxu1 %v4198_v35  ;;  %v1699_v53 = vmul.f32 %v2593_v12, %v2591_v24  ;;  %v2595_v9 = vpop.eup %2594  ;;  %v1733_v24 = vadd.f32 %v1725_v50, %v4206_v11 }
 0x36a   : > { %1866 = vmatprep.subr.bf16.mxu0 %v4199_v46  ;;  %1909 = vmatprep.subr.bf16.mxu1 %v4200_v54 }
 0x36b   : > { %v2597_v6 = vpop.eup %2596  ;;  %v3926_v1 = vsel %vm1703_vm2, %v1699_v53, %v4203_v58 }
 0x36c   : > { %v1700_v51 = vmul.f32 %v2597_v6, %v2595_v9 }
 0x36d   : > { %1867 = vmatpush1.bf16.msra.mxu0 %v4201_v62  ;;  %1910 = vmatpush1.bf16.msra.mxu1 %v4202_v3 }
 0x36e   : > { %v3931_v21 = vsel %vm1703_vm2, %v1700_v51, %v4204_v38  ;;  %v2276_v38 = vld [vmem:[%s2786_s28 + $0x60] sm:$0xff] }
 0x36f   : > { %v1851_v13 = vpack.c.bf16 %v3931_v21, %v3926_v1  ;;  %v1835_v45 = vunpack.c.l.bf16 %v2276_v38  ;;  %v1836_v61 = vunpack.c.h.bf16 %v2276_v38 }
 0x371   : > { %1885 = vmatmul.mubr.bf16.vlgmr.msra.gmra.mrb[28].mxu0 %v1851_v13  ;;  %1928 = vmatmul.mubr.bf16.vlgmr.msra.gmra.mrb[28].mxu1 %v1851_v13 }
 0x423   : > { %v1770_v29 = vpop.f32.mrb[24].mxu0  ;;  %v1813_v37 = vpop.f32.mrb[24].mxu1 }
 0x424   : > { %v1822_v60 = vadd.f32 %v1770_v29, %v1727_v36  ;;  %v1772_v43 = vpop.f32.mrb[25].mxu0  ;;  %v1815_v56 = vpop.f32.mrb[25].mxu1  ;;  %v1824_v12 = vadd.f32 %v1813_v37, %v1729_v27 }
 0x425   : > { %v1823_v18 = vadd.f32 %v1772_v43, %v1728_v34  ;;  %v1774_v25 = vpop.f32.mrb[26].mxu0  ;;  %v1817_v20 = vpop.f32.mrb[26].mxu1  ;;  %v1825_v41 = vadd.f32 %v1815_v56, %v1730_v0  ;;  %v1840_v56 = vunpack.c.h.bf16 %v2278_v59 }
 0x426   : > { %v2280_v39 = vmul.f32 -1.442695, %v1822_v60  ;;  %v1826_v22 = vadd.f32 %v1774_v25, %v1731_v44  ;;  %v1776_v23 = vpop.f32.mrb[27].mxu0  ;;  %v1819_v48 = vpop.f32.mrb[27].mxu1  ;;  %v1828_v53 = vadd.f32 %v1817_v20, %v1733_v24  ;;  %v1839_v44 = vunpack.c.l.bf16 %v2278_v59  ;;  %v4207_v60 = vld [vmem:[#allocation44_spill] sm:$0xff]  ;;  %v4208_v25 = vld [vmem:[#allocation45_spill] sm:$0xff] }
 0x427   : > { %v2282_v8 = vmul.f32 -1.442695, %v1823_v18  ;;  %v1827_v15 = vadd.f32 %v1776_v23, %v1732_v55  ;;  %v2284_v16 = vmul.f32 -1.442695, %v1825_v41  ;;  %v1829_v35 = vadd.f32 %v1819_v48, %v1734_v40 }
 0x428   : > { %2598 = vpow2.f32 %v2280_v39  ;;  %v2281_v17 = vmul.f32 -1.442695, %v1826_v22  ;;  %v1843_v43 = vadd.f32 %v1835_v45, %v4207_v60  ;;  %v1844_v20 = vadd.f32 %v1836_v61, %v4208_v25 }
 0x429   : > { %2600 = vpow2.f32 %v2282_v8  ;;  %v2283_v32 = vmul.f32 -1.442695, %v1827_v15  ;;  %v2285_v6 = vmul.f32 -1.442695, %v1829_v35  ;;  %v1838_v22 = vunpack.c.h.bf16 %v2277_v49 }
 0x42a   : > { %2602 = vpow2.f32 %v2281_v17  ;;  %v1847_v23 = vadd.f32 %v1839_v44, %v4207_v60  ;;  %v1848_v11 = vadd.f32 %v1840_v56, %v4208_v25  ;;  %v1837_v41 = vunpack.c.l.bf16 %v2277_v49 }
 0x42b   : > { %2604 = vpow2.f32 %v2283_v32  ;;  %v2279_v32 = vld [vmem:[%s2786_s28 + $0x78] sm:$0xff] }
 0x42c   : > { %2606 = vtanh.f32 %v1824_v12 }
 0x42d   : > { %2608 = vpow2.f32 %v2284_v16  ;;  %v1846_v16 = vadd.f32 %v1838_v22, %v3329_v30 }
 0x42e   : > { %2610 = vtanh.f32 %v1828_v53 }
 0x432   : > { %v2599_v46 = vpop.eup %2598 }
 0x433   : > { %v2601_v54 = vpop.eup %2600  ;;  %v1952_v9 = vadd.f32 1.0, %v2599_v46 }
 0x434   : > { %v1964_v62 = vadd.f32 1.0, %v2601_v54  ;;  %v2603_v3 = vpop.eup %2602 }
 0x435   : > { %2612 = vrcp.f32 %v1952_v9  ;;  %v1953_v2 = vadd.f32 1.0, %v2603_v3  ;;  %v2605_v51 = vpop.eup %2604  ;;  %v1841_v3 = vunpack.c.l.bf16 %v2279_v32 }
 0x436   : > { %2614 = vrcp.f32 %v1964_v62  ;;  %v1965_v58 = vadd.f32 1.0, %v2605_v51  ;;  %v2607_v13 = vpop.eup %2606  ;;  %v1845_v51 = vadd.f32 %v1837_v41, %v3333_v10 }
 0x437   : > { %2616 = vpow2.f32 %v2285_v6  ;;  %v2609_v7 = vpop.eup %2608  ;;  %v1842_v6 = vunpack.c.h.bf16 %v2279_v32 }
 0x438   : > { %2618 = vrcp.f32 %v1953_v2  ;;  %v2611_v47 = vpop.eup %2610  ;;  %v1978_v34 = vadd.f32 1.0, %v2609_v7 }
 0x439   : > { %2620 = vrcp.f32 %v1965_v58 }
 0x43a   : > { %2622 = vrcp.f32 %v1978_v34 }
 0x43f   : > { %v2613_v63 = vpop.eup %2612 }
 0x440   : > { %v2615_v36 = vpop.eup %2614  ;;  %v1986_v52 = vmul.f32 %v2613_v63, %v2607_v13  ;;  %v1850_v13 = vadd.f32 %v1842_v6, %v3329_v30 }
 0x441   : > { %v2617_v29 = vpop.eup %2616  ;;  %v1984_v37 = vmul.f32 %v2615_v36, %v3856_v31 }
 0x442   : > { %v2619_v55 = vpop.eup %2618  ;;  %v1979_v26 = vadd.f32 1.0, %v2617_v29 }
 0x443   : > { %v1988_v5 = vadd.f32 %v1986_v52, %v1984_v37  ;;  %v1987_v18 = vmul.f32 %v2619_v55, %v2611_v47  ;;  %v2621_v39 = vpop.eup %2620 }
 0x444   : > { %v1985_v8 = vmul.f32 %v2621_v39, %v3862_v28  ;;  %v1886_v0 = vpop.f32.mrb[28].mxu0  ;;  %v1929_v15 = vpop.f32.mrb[28].mxu1 }
 0x445   : > { %2624 = vtanh.f32 %v1988_v5  ;;  %v2047_v48 = vsel %vm2044_vm3, %v1988_v5, %v3856_v31  ;;  %v1938_v33 = vadd.f32 %v1886_v0, %v1843_v43  ;;  %v1888_v17 = vpop.f32.mrb[29].mxu0  ;;  %v1931_v50 = vpop.f32.mrb[29].mxu1  ;;  %v1940_v45 = vadd.f32 %v1929_v15, %v1845_v51 }
 0x446   : > { %2057 = vst [vmem:[%s4023_s5] sm:$0xff] %v2047_v48  ;;  %v1989_v27 = vadd.f32 %v1987_v18, %v1985_v8  ;;  %v1939_v40 = vadd.f32 %v1888_v17, %v1844_v20  ;;  %v1890_v24 = vpop.f32.mrb[30].mxu0  ;;  %v1933_v12 = vpop.f32.mrb[30].mxu1  ;;  %2626 = vrcp.f32 %v1979_v26  ;;  %v1941_v38 = vadd.f32 %v1931_v50, %v1846_v16 }
 0x447   : > { %v2286_v31 = vmul.f32 -1.442695, %v1938_v33  ;;  %v1942_v35 = vadd.f32 %v1890_v24, %v1847_v23  ;;  %v1892_v53 = vpop.f32.mrb[31].mxu0  ;;  %v1935_v46 = vpop.f32.mrb[31].mxu1 }
 0x448   : > { %2628 = vtanh.f32 %v1989_v27  ;;  %v2048_v54 = vsel %vm2044_vm3, %v1989_v27, %v3862_v28  ;;  %v2288_v9 = vmul.f32 -1.442695, %v1939_v40  ;;  %v1943_v2 = vadd.f32 %v1892_v53, %v1848_v11  ;;  %v2623_v7 = vpop.eup %2622 }
 0x449   : > { %2058 = vst [vmem:[%s4023_s5 + $0x8] sm:$0xff] %v2048_v54  ;;  %2630 = vpow2.f32 %v2286_v31  ;;  %v2287_v62 = vmul.f32 -1.442695, %v1942_v35  ;;  %v1849_v28 = vadd.f32 %v1841_v3, %v3333_v10  ;;  %v2290_v63 = vmul.f32 -1.442695, %v1941_v38 }
 0x44a   : > { %2632 = vpow2.f32 %v2288_v9  ;;  %v2289_v58 = vmul.f32 -1.442695, %v1943_v2  ;;  %v1945_v61 = vadd.f32 %v1935_v46, %v1850_v13 }
 0x44b   : > { %2634 = vpow2.f32 %v2287_v62  ;;  %v1944_v34 = vadd.f32 %v1933_v12, %v1849_v28 }
 0x44c   : > { %2636 = vpow2.f32 %v2289_v58  ;;  %v2291_v49 = vmul.f32 -1.442695, %v1945_v61 }
 0x44d   : > { %2638 = vtanh.f32 %v1940_v45 }
 0x44e   : > { %2640 = vpow2.f32 %v2290_v63 }
 0x44f   : > { %v2625_v59 = vpop.eup %2624  ;;  %2642 = vtanh.f32 %v1944_v34 }
 0x450   : > { %v1992_v47 = vmul.f32 %v2625_v59, %v2623_v7  ;;  %v2627_v36 = vpop.eup %2626 }
 0x452   : > { %v2045_v52 = vsel %vm2044_vm3, %v1992_v47, %v3870_v19  ;;  %v2629_v44 = vpop.eup %2628 }
 0x453   : > { %2053 = vst [vmem:[%s4022_s4] sm:$0xff] %v2045_v52  ;;  %v2631_v30 = vpop.eup %2630  ;;  %v1993_v29 = vmul.f32 %v2629_v44, %v2627_v36 }
 0x454   : > { %v2633_v10 = vpop.eup %2632  ;;  %v2000_v37 = vadd.f32 1.0, %v2631_v30 }
 0x455   : > { %v2046_v55 = vsel %vm2044_vm3, %v1993_v29, %v3875_v57  ;;  %v2012_v60 = vadd.f32 1.0, %v2633_v10  ;;  %v2635_v19 = vpop.eup %2634 }
 0x456   : > { %2054 = vst [vmem:[%s4022_s4 + $0x8] sm:$0xff] %v2046_v55  ;;  %2644 = vrcp.f32 %v2000_v37  ;;  %v2001_v43 = vadd.f32 1.0, %v2635_v19  ;;  %v2637_v56 = vpop.eup %2636 }
 0x457   : > { %2646 = vrcp.f32 %v2012_v60  ;;  %v2013_v5 = vadd.f32 1.0, %v2637_v56  ;;  %v2639_v18 = vpop.eup %2638 }
 0x458   : > { %2648 = vpow2.f32 %v2291_v49  ;;  %v2641_v25 = vpop.eup %2640 }
 0x459   : > { %2650 = vrcp.f32 %v2001_v43  ;;  %v2643_v20 = vpop.eup %2642  ;;  %v2026_v22 = vadd.f32 1.0, %v2641_v25 }
 0x45a   : > { %2652 = vrcp.f32 %v2013_v5 }
 0x45b   : > { %2654 = vrcp.f32 %v2026_v22 }
 0x460   : > { %v2645_v39 = vpop.eup %2644 }
 0x461   : > { %v2647_v57 = vpop.eup %2646  ;;  %v2034_v26 = vmul.f32 %v2645_v39, %v2639_v18 }
 0x462   : > { %v2649_v23 = vpop.eup %2648  ;;  %v2032_v48 = vmul.f32 %v2647_v57, %v3902_v42 }
 0x463   : > { %v2651_v8 = vpop.eup %2650  ;;  %v2027_v17 = vadd.f32 1.0, %v2649_v23 }
 0x464   : > { %v2036_v0 = vadd.f32 %v2034_v26, %v2032_v48  ;;  %v2035_v15 = vmul.f32 %v2651_v8, %v2643_v20  ;;  %v2653_v33 = vpop.eup %2652 }
 0x465   : > { %v2033_v32 = vmul.f32 %v2653_v33, %v3911_v14  ;;  %v2655_v41 = vpop.eup %2654 }
 0x466   : > { %2656 = vtanh.f32 %v2036_v0  ;;  %v2051_v50 = vsel %vm2044_vm3, %v2036_v0, %v3902_v42 }
 0x467   : > { %2294 = vst [vmem:[%s4023_s5 + $0x10] sm:$0xff] %v2051_v50  ;;  %v2037_v11 = vadd.f32 %v2035_v15, %v2033_v32  ;;  %2658 = vrcp.f32 %v2027_v17 }
 0x469   : > { %2660 = vtanh.f32 %v2037_v11  ;;  %v2052_v27 = vsel %vm2044_vm3, %v2037_v11, %v3911_v14 }
 0x46a   : > { %2295 = vst [vmem:[%s4023_s5 + $0x18] sm:$0xff] %v2052_v27 }
 0x470   : > { %v2657_v40 = vpop.eup %2656 }
 0x471   : > { %v2040_v42 = vmul.f32 %v2657_v40, %v2655_v41  ;;  %v2659_v24 = vpop.eup %2658 }
 0x473   : > { %v2049_v12 = vsel %vm2044_vm3, %v2040_v42, %v3926_v1  ;;  %v2661_v31 = vpop.eup %2660 }
 0x474   : > { %2292 = vst [vmem:[%s4022_s4 + $0x10] sm:$0xff] %v2049_v12  ;;  %v2041_v16 = vmul.f32 %v2661_v31, %v2659_v24 }
 0x476   : > { %v2050_v14 = vsel %vm2044_vm3, %v2041_v16, %v3931_v21 }
 0x477   : > { %2293 = vst [vmem:[%s4022_s4 + $0x18] sm:$0xff] %v2050_v14 }
 0x478 PF: > { %s16_s18 = sadd.s32 1, %s2732_s18  }
 0x479   : > { %p13_p9 = scmp.ge.s32.totalorder %s16_s18, 4  }
 0x47b   :  { %15 = sbr.rel (!%p13_p9) target bundleno = 1 (0x1), region = 87 }

</bundles_post_ra>
